<compile_context>
chip_gen: v7x
topology: tpu7x:2x2x1
jax: 0.10.0
libtpu: 0.0.40
codegen_flags: <defaults>
</compile_context>

<pallas_src>
import jax
import jax.numpy as jnp
import numpy as np
from jax.experimental import pallas as pl
from jax.experimental.pallas import tpu as pltpu

# ----------------------------- small synthetic CLIP-ViT config ---------------
BATCH    = 2
CHANNELS = 3
IMAGE    = 16
PATCH    = 8
GRID     = IMAGE // PATCH          # 2
NUM_PATCHES = GRID * GRID          # 4
SEQ      = NUM_PATCHES + 1         # 5  (CLS + patches)
S_PAD    = 8                       # SEQ padded to a sublane multiple
CPP      = CHANNELS * PATCH * PATCH
HIDDEN   = 32
NUM_HEADS = 2
HEAD_DIM = HIDDEN // NUM_HEADS     # 16
INTER    = 4 * HIDDEN              # 128
LAYERS   = 2
EPS      = 1e-5


# ----------------------------- fused Pallas kernel ---------------------------
def _clip_fused_kernel(patches_ref, embed_ref, patch_w_ref, gvec_ref,
                       wqkv_ref, wo_ref, w1_ref, w2_ref,
                       bqkv_ref, lnvec_ref, b1_ref,
                       pooled_ref, lh_ref):
    """Whole CLIP vision forward for ONE batch element (grid axis = batch)."""

    def ln(v, g, b):                              # f32 LayerNorm (VPU/EUP)
        mu = jnp.mean(v, axis=-1, keepdims=True)
        var = jnp.mean(jnp.square(v - mu), axis=-1, keepdims=True)
        return (v - mu) * jax.lax.rsqrt(var + EPS) * g + b

    def mxu(a, w_bf16):                           # bf16 operands, f32 accumulate
        return jnp.dot(a.astype(jnp.bfloat16), w_bf16,
                       preferred_element_type=jnp.float32)

    # ---- patch embedding (conv-as-matmul) + CLS/pos embedding + pre-LN -------
    patches = patches_ref[0]                                      # [S_PAD, CPP]
    x = mxu(patches, patch_w_ref[...]) + embed_ref[...]           # [S_PAD, H]
    x = ln(x, gvec_ref[0:1, :], gvec_ref[1:2, :])

    # key-padding mask for rows SEQ..S_PAD-1, generated in-kernel (no DMA'd bias)
    kv_idx = jax.lax.broadcasted_iota(jnp.int32, (S_PAD, S_PAD), 1)
    key_ok = kv_idx < SEQ                                         # [S_PAD, S_PAD]

    for l in range(LAYERS):          # toy size: unroll; real CLIP: stream layers
        wqkv = wqkv_ref[l]                  # [H, 3H] bf16 (q block pre-scaled)
        wo   = wo_ref[l]                    # [H, H]  bf16
        w1   = w1_ref[l]                    # [H, I]  bf16
        w2   = w2_ref[l]                    # [I, H]  bf16
        bqkv = bqkv_ref[l]                  # [1, 3H] f32 fused q/k/v bias
        b1   = b1_ref[l]                    # [1, I]  f32
        vec  = lnvec_ref[l]                 # [6, H]  f32 packed small vectors
        ln1_g, ln1_b, bo = vec[0:1], vec[1:2], vec[2:3]
        ln2_g, ln2_b, b2 = vec[3:4], vec[4:5], vec[5:6]

        # -------- self attention: per-head contraction over HEAD_DIM ----------
        t = ln(x, ln1_g, ln1_b)
        qkv = mxu(t, wqkv) + bqkv                                  # [S_PAD, 3H]
        q = qkv[:, 0:HIDDEN]
        k = qkv[:, HIDDEN:2 * HIDDEN]
        v = qkv[:, 2 * HIDDEN:3 * HIDDEN]

        def split_heads(a):                                        # [N, S_PAD, D]
            return jnp.stack(
                [a[:, h * HEAD_DIM:(h + 1) * HEAD_DIM] for h in range(NUM_HEADS)],
                axis=0).astype(jnp.bfloat16)

        qs, ks, vs = split_heads(q), split_heads(k), split_heads(v)
        s = jnp.einsum('nqd,nkd->nqk', qs, ks,
                       preferred_element_type=jnp.float32)         # [N, S, S]
        s = jnp.where(key_ok[None], s, -1e30)     # f32-safe; padded keys only
        s = s - jnp.max(s, axis=-1, keepdims=True)
        p = jnp.exp(s)
        p = p * pl.reciprocal(jnp.sum(p, axis=-1, keepdims=True), approx=True)
        o = jnp.einsum('nqk,nkd->nqd', p.astype(jnp.bfloat16), vs,
                       preferred_element_type=jnp.float32)          # [N, S, D]
        attn = jnp.concatenate([o[h] for h in range(NUM_HEADS)], axis=1)  # [S, H]
        x = x + mxu(attn, wo) + bo

        # -------- MLP (quick_gelu) --------------------------------------------
        t2 = ln(x, ln2_g, ln2_b)
        m = mxu(t2, w1) + b1
        m = m * jax.nn.sigmoid(1.702 * m)
        x = x + mxu(m, w2) + b2

    # -------- outputs: last_hidden_state (padded) + CLS pooler ----------------
    lh_ref[0] = x                                                   # [S_PAD, H]
    pooled_ref[0] = ln(x[0:1, :], gvec_ref[2:3, :], gvec_ref[3:4, :])  # [1, H]


def _bcast_spec(shape):
    nd = len(shape)
    return pl.BlockSpec(tuple(shape), lambda b, _n=nd: (0,) * _n)


def _batch_spec(shape):
    blk = (1,) + tuple(shape[1:])
    nz = len(shape) - 1
    return pl.BlockSpec(blk, lambda b, _n=nz: (b,) + (0,) * _n)


def clip_pallas_forward(patches_pad, embed, patch_w, gvec,
                        wqkv, wo, w1, w2, bqkv, lnvec, b1):
    # At real CLIP dims (H=1024, L=24): weights do not fit VMEM resident; add an
    # inner "arbitrary" layer grid axis (or pltpu.emit_pipeline) streaming the
    # bf16 [L, ...] stacks with pl.Buffered, and tile the token axis per core.
    bcast = [embed, patch_w, gvec, wqkv, wo, w1, w2, bqkv, lnvec, b1]
    in_specs = [_batch_spec(patches_pad.shape)] + [_bcast_spec(a.shape) for a in bcast]
    out_shape = (jax.ShapeDtypeStruct((BATCH, 1, HIDDEN), jnp.float32),
                 jax.ShapeDtypeStruct((BATCH, S_PAD, HIDDEN), jnp.float32))
    out_specs = (pl.BlockSpec((1, 1, HIDDEN), lambda b: (b, 0, 0)),
                 pl.BlockSpec((1, S_PAD, HIDDEN), lambda b: (b, 0, 0)))
    return pl.pallas_call(
        _clip_fused_kernel,
        grid=(BATCH,),
        in_specs=in_specs,
        out_specs=out_specs,
        out_shape=out_shape,
        compiler_params=pltpu.CompilerParams(
            dimension_semantics=("parallel",),       # batch axis -> v7x megacore
            vmem_limit_bytes=32 * 1024 * 1024),
    )(patches_pad, embed, patch_w, gvec, wqkv, wo, w1, w2, bqkv, lnvec, b1)


# ----------------------------- glue / parameters -----------------------------
def extract_patches(x):
    """NCHW -> [B, P, C*p*p] with (C, ph, pw) flattening (Conv2d weight order)."""
    B = x.shape[0]
    x = x.reshape(B, CHANNELS, GRID, PATCH, GRID, PATCH)
    x = x.transpose(0, 2, 4, 1, 3, 5)                # B, gh, gw, C, ph, pw
    return x.reshape(B, NUM_PATCHES, CPP)


def _prep_inputs(x, params):
    scale = HEAD_DIM ** -0.5
    patches = extract_patches(x)                                     # [B, P, CPP]
    # row 0 = CLS (zero patch), rows 1..P = patches, rows SEQ..S_PAD-1 = pad
    patches_pad = jnp.zeros((BATCH, S_PAD, CPP), jnp.float32)
    patches_pad = patches_pad.at[:, 1:1 + NUM_PATCHES, :].set(patches)

    # class embedding + position embedding laid out per padded token row
    embed = jnp.zeros((S_PAD, HIDDEN), jnp.float32)
    embed = embed.at[0:SEQ, :].set(params['pos_emb'])
    embed = embed.at[0:1, :].add(params['class_emb'])

    # pre/post LayerNorm params packed into one small [4, H] array
    gvec = jnp.concatenate([params['pre_ln_g'], params['pre_ln_b'],
                            params['post_ln_g'], params['post_ln_b']], axis=0)

    # per-layer weights stacked along a leading LAYERS axis; matmul operands bf16
    lp = params['layers']
    wqkv = jnp.stack([jnp.concatenate([p['wq'] * scale, p['wk'], p['wv']], axis=1)
                      for p in lp]).astype(jnp.bfloat16)             # [L, H, 3H]
    wo = jnp.stack([p['wo'] for p in lp]).astype(jnp.bfloat16)       # [L, H, H]
    w1 = jnp.stack([p['w1'] for p in lp]).astype(jnp.bfloat16)       # [L, H, I]
    w2 = jnp.stack([p['w2'] for p in lp]).astype(jnp.bfloat16)       # [L, I, H]
    bqkv = jnp.stack([jnp.concatenate([p['bq'] * scale, p['bk'], p['bv']], axis=1)
                      for p in lp])                                  # [L, 1, 3H] f32
    lnvec = jnp.stack([jnp.concatenate(
        [p['ln1_g'], p['ln1_b'], p['bo'], p['ln2_g'], p['ln2_b'], p['b2']], axis=0)
        for p in lp])                                                # [L, 6, H] f32
    b1 = jnp.stack([p['b1'] for p in lp])                            # [L, 1, I] f32
    patch_w = params['patch_w'].astype(jnp.bfloat16)                 # [CPP, H]

    return (patches_pad, embed, patch_w, gvec, wqkv, wo, w1, w2, bqkv, lnvec, b1)


def clip_vision_forward(x, params, output_type='pooler_output'):
    """ClipBaseModel.forward: pixel_values [B,3,H,W] -> pooler_output [B, HIDDEN]
    (or last_hidden_state [B, SEQ, HIDDEN])."""
    pooled, last_hidden = clip_pallas_forward(*_prep_inputs(x, params))
    if output_type == 'last_hidden_state':
        return last_hidden[:, :SEQ, :]
    return pooled[:, 0, :]


def init_params(seed=0):
    key = jax.random.PRNGKey(seed)
    ks = list(jax.random.split(key, 3 + 12 * LAYERS))
    it = iter(ks)

    def nrm(shape, scale=0.02):
        return (scale * jax.random.normal(next(it), shape)).astype(jnp.float32)

    params = {
        'patch_w':   nrm((CPP, HIDDEN)),
        'class_emb': nrm((1, HIDDEN)),
        'pos_emb':   nrm((SEQ, HIDDEN)),
        'pre_ln_g':  jnp.ones((1, HIDDEN), jnp.float32),
        'pre_ln_b':  jnp.zeros((1, HIDDEN), jnp.float32),
        'post_ln_g': jnp.ones((1, HIDDEN), jnp.float32),
        'post_ln_b': jnp.zeros((1, HIDDEN), jnp.float32),
        'layers': [],
    }
    for _ in range(LAYERS):
        params['layers'].append({
            'ln1_g': jnp.ones((1, HIDDEN), jnp.float32),
            'ln1_b': jnp.zeros((1, HIDDEN), jnp.float32),
            'wq': nrm((HIDDEN, HIDDEN)), 'bq': nrm((1, HIDDEN)),
            'wk': nrm((HIDDEN, HIDDEN)), 'bk': nrm((1, HIDDEN)),
            'wv': nrm((HIDDEN, HIDDEN)), 'bv': nrm((1, HIDDEN)),
            'wo': nrm((HIDDEN, HIDDEN)), 'bo': nrm((1, HIDDEN)),
            'ln2_g': jnp.ones((1, HIDDEN), jnp.float32),
            'ln2_b': jnp.zeros((1, HIDDEN), jnp.float32),
            'w1': nrm((HIDDEN, INTER)),  'b1': nrm((1, INTER)),
            'w2': nrm((INTER, HIDDEN)),  'b2': nrm((1, HIDDEN)),
        })
    return params


# ----------------------------- pure-JAX reference ----------------------------
def _layernorm_ref(x, g, b):
    mu = jnp.mean(x, axis=-1, keepdims=True)
    var = jnp.mean((x - mu) ** 2, axis=-1, keepdims=True)
    return (x - mu) / jnp.sqrt(var + EPS) * g + b


def clip_ref(x, params, output_type='pooler_output'):
    B = x.shape[0]
    pe = extract_patches(x) @ params['patch_w']
    cls = jnp.broadcast_to(params['class_emb'][None], (B, 1, HIDDEN))
    h = jnp.concatenate([cls, pe], axis=1) + params['pos_emb'][None]
    h = _layernorm_ref(h, params['pre_ln_g'], params['pre_ln_b'])
    for p in params['layers']:
        res = h
        t = _layernorm_ref(h, p['ln1_g'], p['ln1_b'])
        q = (t @ p['wq'] + p['bq']).reshape(B, SEQ, NUM_HEADS, HEAD_DIM) * (HEAD_DIM ** -0.5)
        k = (t @ p['wk'] + p['bk']).reshape(B, SEQ, NUM_HEADS, HEAD_DIM)
        v = (t @ p['wv'] + p['bv']).reshape(B, SEQ, NUM_HEADS, HEAD_DIM)
        s = jnp.einsum('bqhd,bkhd->bhqk', q, k)
        a = jax.nn.softmax(s, axis=-1)
        o = jnp.einsum('bhqk,bkhd->bqhd', a, v).reshape(B, SEQ, HIDDEN)
        h = res + (o @ p['wo'] + p['bo'])
        res = h
        t = _layernorm_ref(h, p['ln2_g'], p['ln2_b'])
        m = t @ p['w1'] + p['b1']
        m = m * jax.nn.sigmoid(1.702 * m)
        h = res + (m @ p['w2'] + p['b2'])
    if output_type == 'last_hidden_state':
        return h
    return _layernorm_ref(h[:, 0, :], params['post_ln_g'], params['post_ln_b'])


# ----------------------------- main -------------------------------------------
if __name__ == "__main__":
    params = init_params(0)
    x = jax.random.normal(jax.random.PRNGKey(0),
                          (BATCH, CHANNELS, IMAGE, IMAGE), jnp.float32)

    fwd = jax.jit(clip_vision_forward, static_argnames=('output_type',))

    # tolerance reflects bf16 MXU operands (f32 accumulation); reference is f32
    out = jax.block_until_ready(fwd(x, params, output_type='pooler_output'))
    assert out.shape == (BATCH, HIDDEN), out.shape
    ref = clip_ref(x, params, output_type='pooler_output')
    np.testing.assert_allclose(np.asarray(out), np.asarray(ref), atol=2e-2, rtol=2e-2)

    lhs = jax.block_until_ready(fwd(x, params, output_type='last_hidden_state'))
    assert lhs.shape == (BATCH, SEQ, HIDDEN), lhs.shape
    lhs_ref = clip_ref(x, params, output_type='last_hidden_state')
    np.testing.assert_allclose(np.asarray(lhs), np.asarray(lhs_ref), atol=2e-2, rtol=2e-2)

    print("KERNEL_OK")
</pallas_src>

<mosaic_0001>
module attributes {stable_mosaic.version = 11 : i64} {
  func.func @_clip_fused_kernel(%arg0: i32, %arg1: memref<1x8x192xf32, #tpu.memory_space<vmem>>, %arg2: memref<8x32xf32, #tpu.memory_space<vmem>>, %arg3: memref<192x32xbf16, #tpu.memory_space<vmem>>, %arg4: memref<4x32xf32, #tpu.memory_space<vmem>>, %arg5: memref<2x32x96xbf16, #tpu.memory_space<vmem>>, %arg6: memref<2x32x32xbf16, #tpu.memory_space<vmem>>, %arg7: memref<2x32x128xbf16, #tpu.memory_space<vmem>>, %arg8: memref<2x128x32xbf16, #tpu.memory_space<vmem>>, %arg9: memref<2x1x96xf32, #tpu.memory_space<vmem>>, %arg10: memref<2x6x32xf32, #tpu.memory_space<vmem>>, %arg11: memref<2x1x128xf32, #tpu.memory_space<vmem>>, %arg12: memref<1x1x32xf32, #tpu.memory_space<vmem>>, %arg13: memref<1x8x32xf32, #tpu.memory_space<vmem>>) attributes {dimension_semantics = [#tpu.dimension_semantics<parallel>], iteration_bounds = array<i64: 2>, scalar_prefetch = 0 : i64, scratch_operands = 0 : i64, tpu.core_type = #tpu.core_type<tc>, window_params = [{transform_indices = @transform_0, window_bounds = array<i64: 1, 8, 192>}, {pipeline_mode = #tpu.pipeline_mode<synchronous>, transform_indices = @transform_1, window_bounds = array<i64: 8, 32>}, {pipeline_mode = #tpu.pipeline_mode<synchronous>, transform_indices = @transform_2, window_bounds = array<i64: 192, 32>}, {pipeline_mode = #tpu.pipeline_mode<synchronous>, transform_indices = @transform_3, window_bounds = array<i64: 4, 32>}, {pipeline_mode = #tpu.pipeline_mode<synchronous>, transform_indices = @transform_4, window_bounds = array<i64: 2, 32, 96>}, {pipeline_mode = #tpu.pipeline_mode<synchronous>, transform_indices = @transform_5, window_bounds = array<i64: 2, 32, 32>}, {pipeline_mode = #tpu.pipeline_mode<synchronous>, transform_indices = @transform_6, window_bounds = array<i64: 2, 32, 128>}, {pipeline_mode = #tpu.pipeline_mode<synchronous>, transform_indices = @transform_7, window_bounds = array<i64: 2, 128, 32>}, {pipeline_mode = #tpu.pipeline_mode<synchronous>, transform_indices = @transform_8, window_bounds = array<i64: 2, 1, 96>}, {pipeline_mode = #tpu.pipeline_mode<synchronous>, transform_indices = @transform_9, window_bounds = array<i64: 2, 6, 32>}, {pipeline_mode = #tpu.pipeline_mode<synchronous>, transform_indices = @transform_10, window_bounds = array<i64: 2, 1, 128>}, {transform_indices = @transform_11, window_bounds = array<i64: 1, 1, 32>}, {transform_indices = @transform_12, window_bounds = array<i64: 1, 8, 32>}]} {
    %c0 = arith.constant 0 : index
    %c0_0 = arith.constant 0 : index
    %c0_1 = arith.constant 0 : index
    %0 = vector.load %arg1[%c0, %c0_0, %c0_1] : memref<1x8x192xf32, #tpu.memory_space<vmem>>, vector<1x8x192xf32>
    %1 = vector.shape_cast %0 : vector<1x8x192xf32> to vector<8x192xf32>
    %c0_2 = arith.constant 0 : index
    %c0_3 = arith.constant 0 : index
    %2 = vector.load %arg3[%c0_2, %c0_3] : memref<192x32xbf16, #tpu.memory_space<vmem>>, vector<192x32xbf16>
    %3 = arith.truncf %1 : vector<8x192xf32> to vector<8x192xbf16>
    %cst = arith.constant dense<0.000000e+00> : vector<8x32xf32>
    %4 = tpu.matmul %3, %2, %cst {dimension_numbers = #tpu.dot_dimension_numbers<[1], [0], [0], [1], [0, 0, 1, 1], [], []>} : vector<8x192xbf16>, vector<192x32xbf16>, vector<8x32xf32> -> vector<8x32xf32>
    %c0_4 = arith.constant 0 : index
    %c0_5 = arith.constant 0 : index
    %5 = vector.load %arg2[%c0_4, %c0_5] : memref<8x32xf32, #tpu.memory_space<vmem>>, vector<8x32xf32>
    %6 = arith.addf %4, %5 : vector<8x32xf32>
    %c0_6 = arith.constant 0 : index
    %c0_7 = arith.constant 0 : index
    %7 = vector.load %arg4[%c0_6, %c0_7] : memref<4x32xf32, #tpu.memory_space<vmem>>, vector<1x32xf32>
    %c1 = arith.constant 1 : index
    %c0_8 = arith.constant 0 : index
    %8 = vector.load %arg4[%c1, %c0_8] : memref<4x32xf32, #tpu.memory_space<vmem>>, vector<1x32xf32>
    %cst_9 = arith.constant dense<0.000000e+00> : vector<8xf32>
    %9 = vector.multi_reduction <add>, %6, %cst_9 [1] : vector<8x32xf32> to vector<8xf32>
    %10 = vector.shape_cast %9 : vector<8xf32> to vector<8x1xf32>
    %cst_10 = arith.constant 3.200000e+01 : f32
    %11 = vector.broadcast %cst_10 : f32 to vector<8x1xf32>
    %12 = arith.divf %10, %11 : vector<8x1xf32>
    %13 = vector.broadcast %12 : vector<8x1xf32> to vector<8x32xf32>
    %14 = arith.subf %6, %13 : vector<8x32xf32>
    %15 = arith.mulf %14, %14 : vector<8x32xf32>
    %cst_11 = arith.constant dense<0.000000e+00> : vector<8xf32>
    %16 = vector.multi_reduction <add>, %15, %cst_11 [1] : vector<8x32xf32> to vector<8xf32>
    %17 = vector.shape_cast %16 : vector<8xf32> to vector<8x1xf32>
    %cst_12 = arith.constant 3.200000e+01 : f32
    %18 = vector.broadcast %cst_12 : f32 to vector<8x1xf32>
    %19 = arith.divf %17, %18 : vector<8x1xf32>
    %20 = vector.broadcast %12 : vector<8x1xf32> to vector<8x32xf32>
    %21 = arith.subf %6, %20 : vector<8x32xf32>
    %cst_13 = arith.constant 9.99999974E-6 : f32
    %22 = vector.broadcast %cst_13 : f32 to vector<8x1xf32>
    %23 = arith.addf %19, %22 : vector<8x1xf32>
    %24 = math.rsqrt %23 : vector<8x1xf32>
    %25 = vector.broadcast %24 : vector<8x1xf32> to vector<8x32xf32>
    %26 = arith.mulf %21, %25 : vector<8x32xf32>
    %27 = vector.broadcast %7 : vector<1x32xf32> to vector<8x32xf32>
    %28 = arith.mulf %26, %27 : vector<8x32xf32>
    %29 = vector.broadcast %8 : vector<1x32xf32> to vector<8x32xf32>
    %30 = arith.addf %28, %29 : vector<8x32xf32>
    %31 = tpu.iota {dimensions = array<i32: 1>} : vector<8x8xi32>
    %c5_i32 = arith.constant 5 : i32
    %32 = vector.broadcast %c5_i32 : i32 to vector<8x8xi32>
    %33 = arith.cmpi slt, %31, %32 : vector<8x8xi32>
    %c0_14 = arith.constant 0 : index
    %c0_15 = arith.constant 0 : index
    %c0_16 = arith.constant 0 : index
    %34 = vector.load %arg5[%c0_14, %c0_15, %c0_16] : memref<2x32x96xbf16, #tpu.memory_space<vmem>>, vector<1x32x96xbf16>
    %35 = vector.shape_cast %34 : vector<1x32x96xbf16> to vector<32x96xbf16>
    %c0_17 = arith.constant 0 : index
    %c0_18 = arith.constant 0 : index
    %c0_19 = arith.constant 0 : index
    %36 = vector.load %arg6[%c0_17, %c0_18, %c0_19] : memref<2x32x32xbf16, #tpu.memory_space<vmem>>, vector<1x32x32xbf16>
    %37 = vector.shape_cast %36 : vector<1x32x32xbf16> to vector<32x32xbf16>
    %c0_20 = arith.constant 0 : index
    %c0_21 = arith.constant 0 : index
    %c0_22 = arith.constant 0 : index
    %38 = vector.load %arg7[%c0_20, %c0_21, %c0_22] : memref<2x32x128xbf16, #tpu.memory_space<vmem>>, vector<1x32x128xbf16>
    %39 = vector.shape_cast %38 : vector<1x32x128xbf16> to vector<32x128xbf16>
    %c0_23 = arith.constant 0 : index
    %c0_24 = arith.constant 0 : index
    %c0_25 = arith.constant 0 : index
    %40 = vector.load %arg8[%c0_23, %c0_24, %c0_25] : memref<2x128x32xbf16, #tpu.memory_space<vmem>>, vector<1x128x32xbf16>
    %41 = vector.shape_cast %40 : vector<1x128x32xbf16> to vector<128x32xbf16>
    %c0_26 = arith.constant 0 : index
    %c0_27 = arith.constant 0 : index
    %c0_28 = arith.constant 0 : index
    %42 = vector.load %arg9[%c0_26, %c0_27, %c0_28] : memref<2x1x96xf32, #tpu.memory_space<vmem>>, vector<1x1x96xf32>
    %43 = vector.shape_cast %42 : vector<1x1x96xf32> to vector<1x96xf32>
    %c0_29 = arith.constant 0 : index
    %c0_30 = arith.constant 0 : index
    %c0_31 = arith.constant 0 : index
    %44 = vector.load %arg11[%c0_29, %c0_30, %c0_31] : memref<2x1x128xf32, #tpu.memory_space<vmem>>, vector<1x1x128xf32>
    %45 = vector.shape_cast %44 : vector<1x1x128xf32> to vector<1x128xf32>
    %c0_32 = arith.constant 0 : index
    %c0_33 = arith.constant 0 : index
    %c0_34 = arith.constant 0 : index
    %46 = vector.load %arg10[%c0_32, %c0_33, %c0_34] : memref<2x6x32xf32, #tpu.memory_space<vmem>>, vector<1x6x32xf32>
    %47 = vector.shape_cast %46 : vector<1x6x32xf32> to vector<6x32xf32>
    %48 = vector.extract_strided_slice %47 {offsets = [0, 0], sizes = [1, 32], strides = [1, 1]} : vector<6x32xf32> to vector<1x32xf32>
    %49 = vector.extract_strided_slice %47 {offsets = [1, 0], sizes = [1, 32], strides = [1, 1]} : vector<6x32xf32> to vector<1x32xf32>
    %50 = vector.extract_strided_slice %47 {offsets = [2, 0], sizes = [1, 32], strides = [1, 1]} : vector<6x32xf32> to vector<1x32xf32>
    %51 = vector.extract_strided_slice %47 {offsets = [3, 0], sizes = [1, 32], strides = [1, 1]} : vector<6x32xf32> to vector<1x32xf32>
    %52 = vector.extract_strided_slice %47 {offsets = [4, 0], sizes = [1, 32], strides = [1, 1]} : vector<6x32xf32> to vector<1x32xf32>
    %53 = vector.extract_strided_slice %47 {offsets = [5, 0], sizes = [1, 32], strides = [1, 1]} : vector<6x32xf32> to vector<1x32xf32>
    %cst_35 = arith.constant dense<0.000000e+00> : vector<8xf32>
    %54 = vector.multi_reduction <add>, %30, %cst_35 [1] : vector<8x32xf32> to vector<8xf32>
    %55 = vector.shape_cast %54 : vector<8xf32> to vector<8x1xf32>
    %cst_36 = arith.constant 3.200000e+01 : f32
    %56 = vector.broadcast %cst_36 : f32 to vector<8x1xf32>
    %57 = arith.divf %55, %56 : vector<8x1xf32>
    %58 = vector.broadcast %57 : vector<8x1xf32> to vector<8x32xf32>
    %59 = arith.subf %30, %58 : vector<8x32xf32>
    %60 = arith.mulf %59, %59 : vector<8x32xf32>
    %cst_37 = arith.constant dense<0.000000e+00> : vector<8xf32>
    %61 = vector.multi_reduction <add>, %60, %cst_37 [1] : vector<8x32xf32> to vector<8xf32>
    %62 = vector.shape_cast %61 : vector<8xf32> to vector<8x1xf32>
    %cst_38 = arith.constant 3.200000e+01 : f32
    %63 = vector.broadcast %cst_38 : f32 to vector<8x1xf32>
    %64 = arith.divf %62, %63 : vector<8x1xf32>
    %65 = vector.broadcast %57 : vector<8x1xf32> to vector<8x32xf32>
    %66 = arith.subf %30, %65 : vector<8x32xf32>
    %cst_39 = arith.constant 9.99999974E-6 : f32
    %67 = vector.broadcast %cst_39 : f32 to vector<8x1xf32>
    %68 = arith.addf %64, %67 : vector<8x1xf32>
    %69 = math.rsqrt %68 : vector<8x1xf32>
    %70 = vector.broadcast %69 : vector<8x1xf32> to vector<8x32xf32>
    %71 = arith.mulf %66, %70 : vector<8x32xf32>
    %72 = vector.broadcast %48 : vector<1x32xf32> to vector<8x32xf32>
    %73 = arith.mulf %71, %72 : vector<8x32xf32>
    %74 = vector.broadcast %49 : vector<1x32xf32> to vector<8x32xf32>
    %75 = arith.addf %73, %74 : vector<8x32xf32>
    %76 = arith.truncf %75 : vector<8x32xf32> to vector<8x32xbf16>
    %cst_40 = arith.constant dense<0.000000e+00> : vector<8x96xf32>
    %77 = tpu.matmul %76, %35, %cst_40 {dimension_numbers = #tpu.dot_dimension_numbers<[1], [0], [0], [1], [0, 0, 1, 1], [], []>} : vector<8x32xbf16>, vector<32x96xbf16>, vector<8x96xf32> -> vector<8x96xf32>
    %78 = vector.broadcast %43 : vector<1x96xf32> to vector<8x96xf32>
    %79 = arith.addf %77, %78 : vector<8x96xf32>
    %80 = vector.extract_strided_slice %79 {offsets = [0, 0], sizes = [8, 32], strides = [1, 1]} : vector<8x96xf32> to vector<8x32xf32>
    %81 = vector.extract_strided_slice %79 {offsets = [0, 32], sizes = [8, 32], strides = [1, 1]} : vector<8x96xf32> to vector<8x32xf32>
    %82 = vector.extract_strided_slice %79 {offsets = [0, 64], sizes = [8, 32], strides = [1, 1]} : vector<8x96xf32> to vector<8x32xf32>
    %83 = vector.extract_strided_slice %80 {offsets = [0, 0], sizes = [8, 16], strides = [1, 1]} : vector<8x32xf32> to vector<8x16xf32>
    %84 = vector.extract_strided_slice %80 {offsets = [0, 16], sizes = [8, 16], strides = [1, 1]} : vector<8x32xf32> to vector<8x16xf32>
    %85 = vector.shape_cast %83 : vector<8x16xf32> to vector<1x8x16xf32>
    %86 = vector.shape_cast %84 : vector<8x16xf32> to vector<1x8x16xf32>
    %87 = tpu.concatenate %85, %86 in 0 : vector<1x8x16xf32>, vector<1x8x16xf32> -> vector<2x8x16xf32>
    %88 = arith.truncf %87 : vector<2x8x16xf32> to vector<2x8x16xbf16>
    %89 = vector.extract_strided_slice %81 {offsets = [0, 0], sizes = [8, 16], strides = [1, 1]} : vector<8x32xf32> to vector<8x16xf32>
    %90 = vector.extract_strided_slice %81 {offsets = [0, 16], sizes = [8, 16], strides = [1, 1]} : vector<8x32xf32> to vector<8x16xf32>
    %91 = vector.shape_cast %89 : vector<8x16xf32> to vector<1x8x16xf32>
    %92 = vector.shape_cast %90 : vector<8x16xf32> to vector<1x8x16xf32>
    %93 = tpu.concatenate %91, %92 in 0 : vector<1x8x16xf32>, vector<1x8x16xf32> -> vector<2x8x16xf32>
    %94 = arith.truncf %93 : vector<2x8x16xf32> to vector<2x8x16xbf16>
    %95 = vector.extract_strided_slice %82 {offsets = [0, 0], sizes = [8, 16], strides = [1, 1]} : vector<8x32xf32> to vector<8x16xf32>
    %96 = vector.extract_strided_slice %82 {offsets = [0, 16], sizes = [8, 16], strides = [1, 1]} : vector<8x32xf32> to vector<8x16xf32>
    %97 = vector.shape_cast %95 : vector<8x16xf32> to vector<1x8x16xf32>
    %98 = vector.shape_cast %96 : vector<8x16xf32> to vector<1x8x16xf32>
    %99 = tpu.concatenate %97, %98 in 0 : vector<1x8x16xf32>, vector<1x8x16xf32> -> vector<2x8x16xf32>
    %100 = arith.truncf %99 : vector<2x8x16xf32> to vector<2x8x16xbf16>
    "tpu.trace_start"() <{level = 10 : i32, message = "nqd,nkd->nqk"}> : () -> ()
    %cst_41 = arith.constant dense<0.000000e+00> : vector<2x8x8xf32>
    %101 = tpu.matmul %88, %94, %cst_41 {dimension_numbers = #tpu.dot_dimension_numbers<[2], [2], [1], [1], [0, 0, 0, 1, 1, 1], [0], [0]>} : vector<2x8x16xbf16>, vector<2x8x16xbf16>, vector<2x8x8xf32> -> vector<2x8x8xf32>
    "tpu.trace_stop"() : () -> ()
    %102 = vector.shape_cast %33 : vector<8x8xi1> to vector<1x8x8xi1>
    %cst_42 = arith.constant -1.000000e+30 : f32
    %103 = vector.shape_cast %102 : vector<1x8x8xi1> to vector<1x8x8xi1>
    %104 = vector.broadcast %103 : vector<1x8x8xi1> to vector<2x8x8xi1>
    %105 = vector.broadcast %cst_42 : f32 to vector<2x8x8xf32>
    %106 = arith.select %104, %101, %105 : vector<2x8x8xi1>, vector<2x8x8xf32>
    %cst_43 = arith.constant dense<0xFF800000> : vector<2x8xf32>
    %107 = vector.multi_reduction <maximumf>, %106, %cst_43 [2] : vector<2x8x8xf32> to vector<2x8xf32>
    %108 = vector.shape_cast %107 : vector<2x8xf32> to vector<2x8x1xf32>
    %109 = vector.broadcast %108 : vector<2x8x1xf32> to vector<2x8x8xf32>
    %110 = arith.subf %106, %109 : vector<2x8x8xf32>
    %111 = math.exp %110 : vector<2x8x8xf32>
    %cst_44 = arith.constant dense<0.000000e+00> : vector<2x8xf32>
    %112 = vector.multi_reduction <add>, %111, %cst_44 [2] : vector<2x8x8xf32> to vector<2x8xf32>
    %113 = vector.shape_cast %112 : vector<2x8xf32> to vector<2x8x1xf32>
    %114 = tpu.reciprocal %113 {approx = true} : vector<2x8x1xf32> -> vector<2x8x1xf32>
    %115 = vector.broadcast %114 : vector<2x8x1xf32> to vector<2x8x8xf32>
    %116 = arith.mulf %111, %115 : vector<2x8x8xf32>
    %117 = arith.truncf %116 : vector<2x8x8xf32> to vector<2x8x8xbf16>
    "tpu.trace_start"() <{level = 10 : i32, message = "nqk,nkd->nqd"}> : () -> ()
    %cst_45 = arith.constant dense<0.000000e+00> : vector<2x8x16xf32>
    %118 = tpu.matmul %117, %100, %cst_45 {dimension_numbers = #tpu.dot_dimension_numbers<[2], [1], [1], [2], [0, 0, 0, 1, 1, 2], [0], [0]>} : vector<2x8x8xbf16>, vector<2x8x16xbf16>, vector<2x8x16xf32> -> vector<2x8x16xf32>
    "tpu.trace_stop"() : () -> ()
    %119 = vector.extract_strided_slice %118 {offsets = [0, 0, 0], sizes = [1, 8, 16], strides = [1, 1, 1]} : vector<2x8x16xf32> to vector<1x8x16xf32>
    %120 = vector.shape_cast %119 : vector<1x8x16xf32> to vector<8x16xf32>
    %121 = vector.extract_strided_slice %118 {offsets = [1, 0, 0], sizes = [1, 8, 16], strides = [1, 1, 1]} : vector<2x8x16xf32> to vector<1x8x16xf32>
    %122 = vector.shape_cast %121 : vector<1x8x16xf32> to vector<8x16xf32>
    %123 = tpu.concatenate %120, %122 in 1 : vector<8x16xf32>, vector<8x16xf32> -> vector<8x32xf32>
    %124 = arith.truncf %123 : vector<8x32xf32> to vector<8x32xbf16>
    %cst_46 = arith.constant dense<0.000000e+00> : vector<8x32xf32>
    %125 = tpu.matmul %124, %37, %cst_46 {dimension_numbers = #tpu.dot_dimension_numbers<[1], [0], [0], [1], [0, 0, 1, 1], [], []>} : vector<8x32xbf16>, vector<32x32xbf16>, vector<8x32xf32> -> vector<8x32xf32>
    %126 = arith.addf %30, %125 : vector<8x32xf32>
    %127 = vector.broadcast %50 : vector<1x32xf32> to vector<8x32xf32>
    %128 = arith.addf %126, %127 : vector<8x32xf32>
    %cst_47 = arith.constant dense<0.000000e+00> : vector<8xf32>
    %129 = vector.multi_reduction <add>, %128, %cst_47 [1] : vector<8x32xf32> to vector<8xf32>
    %130 = vector.shape_cast %129 : vector<8xf32> to vector<8x1xf32>
    %cst_48 = arith.constant 3.200000e+01 : f32
    %131 = vector.broadcast %cst_48 : f32 to vector<8x1xf32>
    %132 = arith.divf %130, %131 : vector<8x1xf32>
    %133 = vector.broadcast %132 : vector<8x1xf32> to vector<8x32xf32>
    %134 = arith.subf %128, %133 : vector<8x32xf32>
    %135 = arith.mulf %134, %134 : vector<8x32xf32>
    %cst_49 = arith.constant dense<0.000000e+00> : vector<8xf32>
    %136 = vector.multi_reduction <add>, %135, %cst_49 [1] : vector<8x32xf32> to vector<8xf32>
    %137 = vector.shape_cast %136 : vector<8xf32> to vector<8x1xf32>
    %cst_50 = arith.constant 3.200000e+01 : f32
    %138 = vector.broadcast %cst_50 : f32 to vector<8x1xf32>
    %139 = arith.divf %137, %138 : vector<8x1xf32>
    %140 = vector.broadcast %132 : vector<8x1xf32> to vector<8x32xf32>
    %141 = arith.subf %128, %140 : vector<8x32xf32>
    %cst_51 = arith.constant 9.99999974E-6 : f32
    %142 = vector.broadcast %cst_51 : f32 to vector<8x1xf32>
    %143 = arith.addf %139, %142 : vector<8x1xf32>
    %144 = math.rsqrt %143 : vector<8x1xf32>
    %145 = vector.broadcast %144 : vector<8x1xf32> to vector<8x32xf32>
    %146 = arith.mulf %141, %145 : vector<8x32xf32>
    %147 = vector.broadcast %51 : vector<1x32xf32> to vector<8x32xf32>
    %148 = arith.mulf %146, %147 : vector<8x32xf32>
    %149 = vector.broadcast %52 : vector<1x32xf32> to vector<8x32xf32>
    %150 = arith.addf %148, %149 : vector<8x32xf32>
    %151 = arith.truncf %150 : vector<8x32xf32> to vector<8x32xbf16>
    %cst_52 = arith.constant dense<0.000000e+00> : vector<8x128xf32>
    %152 = tpu.matmul %151, %39, %cst_52 {dimension_numbers = #tpu.dot_dimension_numbers<[1], [0], [0], [1], [0, 0, 1, 1], [], []>} : vector<8x32xbf16>, vector<32x128xbf16>, vector<8x128xf32> -> vector<8x128xf32>
    %153 = vector.broadcast %45 : vector<1x128xf32> to vector<8x128xf32>
    %154 = arith.addf %152, %153 : vector<8x128xf32>
    %cst_53 = arith.constant 1.702000e+00 : f32
    %155 = vector.broadcast %cst_53 : f32 to vector<8x128xf32>
    %156 = arith.mulf %155, %154 : vector<8x128xf32>
    %157 = arith.negf %156 : vector<8x128xf32>
    %158 = math.exp %157 : vector<8x128xf32>
    %cst_54 = arith.constant 1.000000e+00 : f32
    %159 = vector.broadcast %cst_54 : f32 to vector<8x128xf32>
    %160 = arith.addf %159, %158 : vector<8x128xf32>
    %161 = arith.divf %159, %160 : vector<8x128xf32>
    %162 = arith.mulf %154, %161 : vector<8x128xf32>
    %163 = arith.truncf %162 : vector<8x128xf32> to vector<8x128xbf16>
    %cst_55 = arith.constant dense<0.000000e+00> : vector<8x32xf32>
    %164 = tpu.matmul %163, %41, %cst_55 {dimension_numbers = #tpu.dot_dimension_numbers<[1], [0], [0], [1], [0, 0, 1, 1], [], []>} : vector<8x128xbf16>, vector<128x32xbf16>, vector<8x32xf32> -> vector<8x32xf32>
    %165 = arith.addf %128, %164 : vector<8x32xf32>
    %166 = vector.broadcast %53 : vector<1x32xf32> to vector<8x32xf32>
    %167 = arith.addf %165, %166 : vector<8x32xf32>
    %c1_56 = arith.constant 1 : index
    %c0_57 = arith.constant 0 : index
    %c0_58 = arith.constant 0 : index
    %168 = vector.load %arg5[%c1_56, %c0_57, %c0_58] : memref<2x32x96xbf16, #tpu.memory_space<vmem>>, vector<1x32x96xbf16>
    %169 = vector.shape_cast %168 : vector<1x32x96xbf16> to vector<32x96xbf16>
    %c1_59 = arith.constant 1 : index
    %c0_60 = arith.constant 0 : index
    %c0_61 = arith.constant 0 : index
    %170 = vector.load %arg6[%c1_59, %c0_60, %c0_61] : memref<2x32x32xbf16, #tpu.memory_space<vmem>>, vector<1x32x32xbf16>
    %171 = vector.shape_cast %170 : vector<1x32x32xbf16> to vector<32x32xbf16>
    %c1_62 = arith.constant 1 : index
    %c0_63 = arith.constant 0 : index
    %c0_64 = arith.constant 0 : index
    %172 = vector.load %arg7[%c1_62, %c0_63, %c0_64] : memref<2x32x128xbf16, #tpu.memory_space<vmem>>, vector<1x32x128xbf16>
    %173 = vector.shape_cast %172 : vector<1x32x128xbf16> to vector<32x128xbf16>
    %c1_65 = arith.constant 1 : index
    %c0_66 = arith.constant 0 : index
    %c0_67 = arith.constant 0 : index
    %174 = vector.load %arg8[%c1_65, %c0_66, %c0_67] : memref<2x128x32xbf16, #tpu.memory_space<vmem>>, vector<1x128x32xbf16>
    %175 = vector.shape_cast %174 : vector<1x128x32xbf16> to vector<128x32xbf16>
    %c1_68 = arith.constant 1 : index
    %c0_69 = arith.constant 0 : index
    %c0_70 = arith.constant 0 : index
    %176 = vector.load %arg9[%c1_68, %c0_69, %c0_70] : memref<2x1x96xf32, #tpu.memory_space<vmem>>, vector<1x1x96xf32>
    %177 = vector.shape_cast %176 : vector<1x1x96xf32> to vector<1x96xf32>
    %c1_71 = arith.constant 1 : index
    %c0_72 = arith.constant 0 : index
    %c0_73 = arith.constant 0 : index
    %178 = vector.load %arg11[%c1_71, %c0_72, %c0_73] : memref<2x1x128xf32, #tpu.memory_space<vmem>>, vector<1x1x128xf32>
    %179 = vector.shape_cast %178 : vector<1x1x128xf32> to vector<1x128xf32>
    %c1_74 = arith.constant 1 : index
    %c0_75 = arith.constant 0 : index
    %c0_76 = arith.constant 0 : index
    %180 = vector.load %arg10[%c1_74, %c0_75, %c0_76] : memref<2x6x32xf32, #tpu.memory_space<vmem>>, vector<1x6x32xf32>
    %181 = vector.shape_cast %180 : vector<1x6x32xf32> to vector<6x32xf32>
    %182 = vector.extract_strided_slice %181 {offsets = [0, 0], sizes = [1, 32], strides = [1, 1]} : vector<6x32xf32> to vector<1x32xf32>
    %183 = vector.extract_strided_slice %181 {offsets = [1, 0], sizes = [1, 32], strides = [1, 1]} : vector<6x32xf32> to vector<1x32xf32>
    %184 = vector.extract_strided_slice %181 {offsets = [2, 0], sizes = [1, 32], strides = [1, 1]} : vector<6x32xf32> to vector<1x32xf32>
    %185 = vector.extract_strided_slice %181 {offsets = [3, 0], sizes = [1, 32], strides = [1, 1]} : vector<6x32xf32> to vector<1x32xf32>
    %186 = vector.extract_strided_slice %181 {offsets = [4, 0], sizes = [1, 32], strides = [1, 1]} : vector<6x32xf32> to vector<1x32xf32>
    %187 = vector.extract_strided_slice %181 {offsets = [5, 0], sizes = [1, 32], strides = [1, 1]} : vector<6x32xf32> to vector<1x32xf32>
    %cst_77 = arith.constant dense<0.000000e+00> : vector<8xf32>
    %188 = vector.multi_reduction <add>, %167, %cst_77 [1] : vector<8x32xf32> to vector<8xf32>
    %189 = vector.shape_cast %188 : vector<8xf32> to vector<8x1xf32>
    %cst_78 = arith.constant 3.200000e+01 : f32
    %190 = vector.broadcast %cst_78 : f32 to vector<8x1xf32>
    %191 = arith.divf %189, %190 : vector<8x1xf32>
    %192 = vector.broadcast %191 : vector<8x1xf32> to vector<8x32xf32>
    %193 = arith.subf %167, %192 : vector<8x32xf32>
    %194 = arith.mulf %193, %193 : vector<8x32xf32>
    %cst_79 = arith.constant dense<0.000000e+00> : vector<8xf32>
    %195 = vector.multi_reduction <add>, %194, %cst_79 [1] : vector<8x32xf32> to vector<8xf32>
    %196 = vector.shape_cast %195 : vector<8xf32> to vector<8x1xf32>
    %cst_80 = arith.constant 3.200000e+01 : f32
    %197 = vector.broadcast %cst_80 : f32 to vector<8x1xf32>
    %198 = arith.divf %196, %197 : vector<8x1xf32>
    %199 = vector.broadcast %191 : vector<8x1xf32> to vector<8x32xf32>
    %200 = arith.subf %167, %199 : vector<8x32xf32>
    %cst_81 = arith.constant 9.99999974E-6 : f32
    %201 = vector.broadcast %cst_81 : f32 to vector<8x1xf32>
    %202 = arith.addf %198, %201 : vector<8x1xf32>
    %203 = math.rsqrt %202 : vector<8x1xf32>
    %204 = vector.broadcast %203 : vector<8x1xf32> to vector<8x32xf32>
    %205 = arith.mulf %200, %204 : vector<8x32xf32>
    %206 = vector.broadcast %182 : vector<1x32xf32> to vector<8x32xf32>
    %207 = arith.mulf %205, %206 : vector<8x32xf32>
    %208 = vector.broadcast %183 : vector<1x32xf32> to vector<8x32xf32>
    %209 = arith.addf %207, %208 : vector<8x32xf32>
    %210 = arith.truncf %209 : vector<8x32xf32> to vector<8x32xbf16>
    %cst_82 = arith.constant dense<0.000000e+00> : vector<8x96xf32>
    %211 = tpu.matmul %210, %169, %cst_82 {dimension_numbers = #tpu.dot_dimension_numbers<[1], [0], [0], [1], [0, 0, 1, 1], [], []>} : vector<8x32xbf16>, vector<32x96xbf16>, vector<8x96xf32> -> vector<8x96xf32>
    %212 = vector.broadcast %177 : vector<1x96xf32> to vector<8x96xf32>
    %213 = arith.addf %211, %212 : vector<8x96xf32>
    %214 = vector.extract_strided_slice %213 {offsets = [0, 0], sizes = [8, 32], strides = [1, 1]} : vector<8x96xf32> to vector<8x32xf32>
    %215 = vector.extract_strided_slice %213 {offsets = [0, 32], sizes = [8, 32], strides = [1, 1]} : vector<8x96xf32> to vector<8x32xf32>
    %216 = vector.extract_strided_slice %213 {offsets = [0, 64], sizes = [8, 32], strides = [1, 1]} : vector<8x96xf32> to vector<8x32xf32>
    %217 = vector.extract_strided_slice %214 {offsets = [0, 0], sizes = [8, 16], strides = [1, 1]} : vector<8x32xf32> to vector<8x16xf32>
    %218 = vector.extract_strided_slice %214 {offsets = [0, 16], sizes = [8, 16], strides = [1, 1]} : vector<8x32xf32> to vector<8x16xf32>
    %219 = vector.shape_cast %217 : vector<8x16xf32> to vector<1x8x16xf32>
    %220 = vector.shape_cast %218 : vector<8x16xf32> to vector<1x8x16xf32>
    %221 = tpu.concatenate %219, %220 in 0 : vector<1x8x16xf32>, vector<1x8x16xf32> -> vector<2x8x16xf32>
    %222 = arith.truncf %221 : vector<2x8x16xf32> to vector<2x8x16xbf16>
    %223 = vector.extract_strided_slice %215 {offsets = [0, 0], sizes = [8, 16], strides = [1, 1]} : vector<8x32xf32> to vector<8x16xf32>
    %224 = vector.extract_strided_slice %215 {offsets = [0, 16], sizes = [8, 16], strides = [1, 1]} : vector<8x32xf32> to vector<8x16xf32>
    %225 = vector.shape_cast %223 : vector<8x16xf32> to vector<1x8x16xf32>
    %226 = vector.shape_cast %224 : vector<8x16xf32> to vector<1x8x16xf32>
    %227 = tpu.concatenate %225, %226 in 0 : vector<1x8x16xf32>, vector<1x8x16xf32> -> vector<2x8x16xf32>
    %228 = arith.truncf %227 : vector<2x8x16xf32> to vector<2x8x16xbf16>
    %229 = vector.extract_strided_slice %216 {offsets = [0, 0], sizes = [8, 16], strides = [1, 1]} : vector<8x32xf32> to vector<8x16xf32>
    %230 = vector.extract_strided_slice %216 {offsets = [0, 16], sizes = [8, 16], strides = [1, 1]} : vector<8x32xf32> to vector<8x16xf32>
    %231 = vector.shape_cast %229 : vector<8x16xf32> to vector<1x8x16xf32>
    %232 = vector.shape_cast %230 : vector<8x16xf32> to vector<1x8x16xf32>
    %233 = tpu.concatenate %231, %232 in 0 : vector<1x8x16xf32>, vector<1x8x16xf32> -> vector<2x8x16xf32>
    %234 = arith.truncf %233 : vector<2x8x16xf32> to vector<2x8x16xbf16>
    "tpu.trace_start"() <{level = 10 : i32, message = "nqd,nkd->nqk"}> : () -> ()
    %cst_83 = arith.constant dense<0.000000e+00> : vector<2x8x8xf32>
    %235 = tpu.matmul %222, %228, %cst_83 {dimension_numbers = #tpu.dot_dimension_numbers<[2], [2], [1], [1], [0, 0, 0, 1, 1, 1], [0], [0]>} : vector<2x8x16xbf16>, vector<2x8x16xbf16>, vector<2x8x8xf32> -> vector<2x8x8xf32>
    "tpu.trace_stop"() : () -> ()
    %236 = vector.shape_cast %33 : vector<8x8xi1> to vector<1x8x8xi1>
    %cst_84 = arith.constant -1.000000e+30 : f32
    %237 = vector.shape_cast %236 : vector<1x8x8xi1> to vector<1x8x8xi1>
    %238 = vector.broadcast %237 : vector<1x8x8xi1> to vector<2x8x8xi1>
    %239 = vector.broadcast %cst_84 : f32 to vector<2x8x8xf32>
    %240 = arith.select %238, %235, %239 : vector<2x8x8xi1>, vector<2x8x8xf32>
    %cst_85 = arith.constant dense<0xFF800000> : vector<2x8xf32>
    %241 = vector.multi_reduction <maximumf>, %240, %cst_85 [2] : vector<2x8x8xf32> to vector<2x8xf32>
    %242 = vector.shape_cast %241 : vector<2x8xf32> to vector<2x8x1xf32>
    %243 = vector.broadcast %242 : vector<2x8x1xf32> to vector<2x8x8xf32>
    %244 = arith.subf %240, %243 : vector<2x8x8xf32>
    %245 = math.exp %244 : vector<2x8x8xf32>
    %cst_86 = arith.constant dense<0.000000e+00> : vector<2x8xf32>
    %246 = vector.multi_reduction <add>, %245, %cst_86 [2] : vector<2x8x8xf32> to vector<2x8xf32>
    %247 = vector.shape_cast %246 : vector<2x8xf32> to vector<2x8x1xf32>
    %248 = tpu.reciprocal %247 {approx = true} : vector<2x8x1xf32> -> vector<2x8x1xf32>
    %249 = vector.broadcast %248 : vector<2x8x1xf32> to vector<2x8x8xf32>
    %250 = arith.mulf %245, %249 : vector<2x8x8xf32>
    %251 = arith.truncf %250 : vector<2x8x8xf32> to vector<2x8x8xbf16>
    "tpu.trace_start"() <{level = 10 : i32, message = "nqk,nkd->nqd"}> : () -> ()
    %cst_87 = arith.constant dense<0.000000e+00> : vector<2x8x16xf32>
    %252 = tpu.matmul %251, %234, %cst_87 {dimension_numbers = #tpu.dot_dimension_numbers<[2], [1], [1], [2], [0, 0, 0, 1, 1, 2], [0], [0]>} : vector<2x8x8xbf16>, vector<2x8x16xbf16>, vector<2x8x16xf32> -> vector<2x8x16xf32>
    "tpu.trace_stop"() : () -> ()
    %253 = vector.extract_strided_slice %252 {offsets = [0, 0, 0], sizes = [1, 8, 16], strides = [1, 1, 1]} : vector<2x8x16xf32> to vector<1x8x16xf32>
    %254 = vector.shape_cast %253 : vector<1x8x16xf32> to vector<8x16xf32>
    %255 = vector.extract_strided_slice %252 {offsets = [1, 0, 0], sizes = [1, 8, 16], strides = [1, 1, 1]} : vector<2x8x16xf32> to vector<1x8x16xf32>
    %256 = vector.shape_cast %255 : vector<1x8x16xf32> to vector<8x16xf32>
    %257 = tpu.concatenate %254, %256 in 1 : vector<8x16xf32>, vector<8x16xf32> -> vector<8x32xf32>
    %258 = arith.truncf %257 : vector<8x32xf32> to vector<8x32xbf16>
    %cst_88 = arith.constant dense<0.000000e+00> : vector<8x32xf32>
    %259 = tpu.matmul %258, %171, %cst_88 {dimension_numbers = #tpu.dot_dimension_numbers<[1], [0], [0], [1], [0, 0, 1, 1], [], []>} : vector<8x32xbf16>, vector<32x32xbf16>, vector<8x32xf32> -> vector<8x32xf32>
    %260 = arith.addf %167, %259 : vector<8x32xf32>
    %261 = vector.broadcast %184 : vector<1x32xf32> to vector<8x32xf32>
    %262 = arith.addf %260, %261 : vector<8x32xf32>
    %cst_89 = arith.constant dense<0.000000e+00> : vector<8xf32>
    %263 = vector.multi_reduction <add>, %262, %cst_89 [1] : vector<8x32xf32> to vector<8xf32>
    %264 = vector.shape_cast %263 : vector<8xf32> to vector<8x1xf32>
    %cst_90 = arith.constant 3.200000e+01 : f32
    %265 = vector.broadcast %cst_90 : f32 to vector<8x1xf32>
    %266 = arith.divf %264, %265 : vector<8x1xf32>
    %267 = vector.broadcast %266 : vector<8x1xf32> to vector<8x32xf32>
    %268 = arith.subf %262, %267 : vector<8x32xf32>
    %269 = arith.mulf %268, %268 : vector<8x32xf32>
    %cst_91 = arith.constant dense<0.000000e+00> : vector<8xf32>
    %270 = vector.multi_reduction <add>, %269, %cst_91 [1] : vector<8x32xf32> to vector<8xf32>
    %271 = vector.shape_cast %270 : vector<8xf32> to vector<8x1xf32>
    %cst_92 = arith.constant 3.200000e+01 : f32
    %272 = vector.broadcast %cst_92 : f32 to vector<8x1xf32>
    %273 = arith.divf %271, %272 : vector<8x1xf32>
    %274 = vector.broadcast %266 : vector<8x1xf32> to vector<8x32xf32>
    %275 = arith.subf %262, %274 : vector<8x32xf32>
    %cst_93 = arith.constant 9.99999974E-6 : f32
    %276 = vector.broadcast %cst_93 : f32 to vector<8x1xf32>
    %277 = arith.addf %273, %276 : vector<8x1xf32>
    %278 = math.rsqrt %277 : vector<8x1xf32>
    %279 = vector.broadcast %278 : vector<8x1xf32> to vector<8x32xf32>
    %280 = arith.mulf %275, %279 : vector<8x32xf32>
    %281 = vector.broadcast %185 : vector<1x32xf32> to vector<8x32xf32>
    %282 = arith.mulf %280, %281 : vector<8x32xf32>
    %283 = vector.broadcast %186 : vector<1x32xf32> to vector<8x32xf32>
    %284 = arith.addf %282, %283 : vector<8x32xf32>
    %285 = arith.truncf %284 : vector<8x32xf32> to vector<8x32xbf16>
    %cst_94 = arith.constant dense<0.000000e+00> : vector<8x128xf32>
    %286 = tpu.matmul %285, %173, %cst_94 {dimension_numbers = #tpu.dot_dimension_numbers<[1], [0], [0], [1], [0, 0, 1, 1], [], []>} : vector<8x32xbf16>, vector<32x128xbf16>, vector<8x128xf32> -> vector<8x128xf32>
    %287 = vector.broadcast %179 : vector<1x128xf32> to vector<8x128xf32>
    %288 = arith.addf %286, %287 : vector<8x128xf32>
    %cst_95 = arith.constant 1.702000e+00 : f32
    %289 = vector.broadcast %cst_95 : f32 to vector<8x128xf32>
    %290 = arith.mulf %289, %288 : vector<8x128xf32>
    %291 = arith.negf %290 : vector<8x128xf32>
    %292 = math.exp %291 : vector<8x128xf32>
    %cst_96 = arith.constant 1.000000e+00 : f32
    %293 = vector.broadcast %cst_96 : f32 to vector<8x128xf32>
    %294 = arith.addf %293, %292 : vector<8x128xf32>
    %295 = arith.divf %293, %294 : vector<8x128xf32>
    %296 = arith.mulf %288, %295 : vector<8x128xf32>
    %297 = arith.truncf %296 : vector<8x128xf32> to vector<8x128xbf16>
    %cst_97 = arith.constant dense<0.000000e+00> : vector<8x32xf32>
    %298 = tpu.matmul %297, %175, %cst_97 {dimension_numbers = #tpu.dot_dimension_numbers<[1], [0], [0], [1], [0, 0, 1, 1], [], []>} : vector<8x128xbf16>, vector<128x32xbf16>, vector<8x32xf32> -> vector<8x32xf32>
    %299 = arith.addf %262, %298 : vector<8x32xf32>
    %300 = vector.broadcast %187 : vector<1x32xf32> to vector<8x32xf32>
    %301 = arith.addf %299, %300 : vector<8x32xf32>
    %c0_98 = arith.constant 0 : index
    %c0_99 = arith.constant 0 : index
    %c0_100 = arith.constant 0 : index
    %302 = vector.load %arg13[%c0_98, %c0_99, %c0_100] : memref<1x8x32xf32, #tpu.memory_space<vmem>>, vector<1x8x32xf32>
    %303 = vector.shape_cast %302 : vector<1x8x32xf32> to vector<8x32xf32>
    %304 = vector.shape_cast %301 : vector<8x32xf32> to vector<1x8x32xf32>
    tpu.vector_store %arg13[%c0_98, %c0_99, %c0_100], %304 {strides = array<i32>} : memref<1x8x32xf32, #tpu.memory_space<vmem>>, vector<1x8x32xf32>,
    %305 = vector.extract_strided_slice %301 {offsets = [0, 0], sizes = [1, 32], strides = [1, 1]} : vector<8x32xf32> to vector<1x32xf32>
    %c2 = arith.constant 2 : index
    %c0_101 = arith.constant 0 : index
    %306 = vector.load %arg4[%c2, %c0_101] : memref<4x32xf32, #tpu.memory_space<vmem>>, vector<1x32xf32>
    %c3 = arith.constant 3 : index
    %c0_102 = arith.constant 0 : index
    %307 = vector.load %arg4[%c3, %c0_102] : memref<4x32xf32, #tpu.memory_space<vmem>>, vector<1x32xf32>
    %cst_103 = arith.constant dense<0.000000e+00> : vector<1xf32>
    %308 = vector.multi_reduction <add>, %305, %cst_103 [1] : vector<1x32xf32> to vector<1xf32>
    %309 = vector.shape_cast %308 : vector<1xf32> to vector<1x1xf32>
    %cst_104 = arith.constant 3.200000e+01 : f32
    %310 = vector.broadcast %cst_104 : f32 to vector<1x1xf32>
    %311 = arith.divf %309, %310 : vector<1x1xf32>
    %312 = vector.broadcast %311 : vector<1x1xf32> to vector<1x32xf32>
    %313 = arith.subf %305, %312 : vector<1x32xf32>
    %314 = arith.mulf %313, %313 : vector<1x32xf32>
    %cst_105 = arith.constant dense<0.000000e+00> : vector<1xf32>
    %315 = vector.multi_reduction <add>, %314, %cst_105 [1] : vector<1x32xf32> to vector<1xf32>
    %316 = vector.shape_cast %315 : vector<1xf32> to vector<1x1xf32>
    %cst_106 = arith.constant 3.200000e+01 : f32
    %317 = vector.broadcast %cst_106 : f32 to vector<1x1xf32>
    %318 = arith.divf %316, %317 : vector<1x1xf32>
    %319 = vector.broadcast %311 : vector<1x1xf32> to vector<1x32xf32>
    %320 = arith.subf %305, %319 : vector<1x32xf32>
    %cst_107 = arith.constant 9.99999974E-6 : f32
    %321 = vector.broadcast %cst_107 : f32 to vector<1x1xf32>
    %322 = arith.addf %318, %321 : vector<1x1xf32>
    %323 = math.rsqrt %322 : vector<1x1xf32>
    %324 = vector.broadcast %323 : vector<1x1xf32> to vector<1x32xf32>
    %325 = arith.mulf %320, %324 : vector<1x32xf32>
    %326 = arith.mulf %325, %306 : vector<1x32xf32>
    %327 = arith.addf %326, %307 : vector<1x32xf32>
    %c0_108 = arith.constant 0 : index
    %c0_109 = arith.constant 0 : index
    %c0_110 = arith.constant 0 : index
    %328 = vector.load %arg12[%c0_108, %c0_109, %c0_110] : memref<1x1x32xf32, #tpu.memory_space<vmem>>, vector<1x1x32xf32>
    %329 = vector.shape_cast %328 : vector<1x1x32xf32> to vector<1x32xf32>
    %330 = vector.shape_cast %327 : vector<1x32xf32> to vector<1x1x32xf32>
    tpu.vector_store %arg12[%c0_108, %c0_109, %c0_110], %330 {strides = array<i32>} : memref<1x1x32xf32, #tpu.memory_space<vmem>>, vector<1x1x32xf32>,
    return
  }
  func.func @transform_0(%arg0: i32) -> (i32, i32, i32) {
    %c0_i32 = arith.constant 0 : i32
    %c0_i32_0 = arith.constant 0 : i32
    %c0_i32_1 = arith.constant 0 : i32
    return %arg0, %c0_i32, %c0_i32_0 : i32, i32, i32
  }
  func.func @transform_1(%arg0: i32) -> (i32, i32) {
    %c0_i32 = arith.constant 0 : i32
    %c0_i32_0 = arith.constant 0 : i32
    %c0_i32_1 = arith.constant 0 : i32
    return %c0_i32, %c0_i32_0 : i32, i32
  }
  func.func @transform_2(%arg0: i32) -> (i32, i32) {
    %c0_i32 = arith.constant 0 : i32
    %c0_i32_0 = arith.constant 0 : i32
    %c0_i32_1 = arith.constant 0 : i32
    return %c0_i32, %c0_i32_0 : i32, i32
  }
  func.func @transform_3(%arg0: i32) -> (i32, i32) {
    %c0_i32 = arith.constant 0 : i32
    %c0_i32_0 = arith.constant 0 : i32
    %c0_i32_1 = arith.constant 0 : i32
    return %c0_i32, %c0_i32_0 : i32, i32
  }
  func.func @transform_4(%arg0: i32) -> (i32, i32, i32) {
    %c0_i32 = arith.constant 0 : i32
    %c0_i32_0 = arith.constant 0 : i32
    %c0_i32_1 = arith.constant 0 : i32
    %c0_i32_2 = arith.constant 0 : i32
    return %c0_i32, %c0_i32_0, %c0_i32_1 : i32, i32, i32
  }
  func.func @transform_5(%arg0: i32) -> (i32, i32, i32) {
    %c0_i32 = arith.constant 0 : i32
    %c0_i32_0 = arith.constant 0 : i32
    %c0_i32_1 = arith.constant 0 : i32
    %c0_i32_2 = arith.constant 0 : i32
    return %c0_i32, %c0_i32_0, %c0_i32_1 : i32, i32, i32
  }
  func.func @transform_6(%arg0: i32) -> (i32, i32, i32) {
    %c0_i32 = arith.constant 0 : i32
    %c0_i32_0 = arith.constant 0 : i32
    %c0_i32_1 = arith.constant 0 : i32
    %c0_i32_2 = arith.constant 0 : i32
    return %c0_i32, %c0_i32_0, %c0_i32_1 : i32, i32, i32
  }
  func.func @transform_7(%arg0: i32) -> (i32, i32, i32) {
    %c0_i32 = arith.constant 0 : i32
    %c0_i32_0 = arith.constant 0 : i32
    %c0_i32_1 = arith.constant 0 : i32
    %c0_i32_2 = arith.constant 0 : i32
    return %c0_i32, %c0_i32_0, %c0_i32_1 : i32, i32, i32
  }
  func.func @transform_8(%arg0: i32) -> (i32, i32, i32) {
    %c0_i32 = arith.constant 0 : i32
    %c0_i32_0 = arith.constant 0 : i32
    %c0_i32_1 = arith.constant 0 : i32
    %c0_i32_2 = arith.constant 0 : i32
    return %c0_i32, %c0_i32_0, %c0_i32_1 : i32, i32, i32
  }
  func.func @transform_9(%arg0: i32) -> (i32, i32, i32) {
    %c0_i32 = arith.constant 0 : i32
    %c0_i32_0 = arith.constant 0 : i32
    %c0_i32_1 = arith.constant 0 : i32
    %c0_i32_2 = arith.constant 0 : i32
    return %c0_i32, %c0_i32_0, %c0_i32_1 : i32, i32, i32
  }
  func.func @transform_10(%arg0: i32) -> (i32, i32, i32) {
    %c0_i32 = arith.constant 0 : i32
    %c0_i32_0 = arith.constant 0 : i32
    %c0_i32_1 = arith.constant 0 : i32
    %c0_i32_2 = arith.constant 0 : i32
    return %c0_i32, %c0_i32_0, %c0_i32_1 : i32, i32, i32
  }
  func.func @transform_11(%arg0: i32) -> (i32, i32, i32) {
    %c0_i32 = arith.constant 0 : i32
    %c0_i32_0 = arith.constant 0 : i32
    %c0_i32_1 = arith.constant 0 : i32
    return %arg0, %c0_i32, %c0_i32_0 : i32, i32, i32
  }
  func.func @transform_12(%arg0: i32) -> (i32, i32, i32) {
    %c0_i32 = arith.constant 0 : i32
    %c0_i32_0 = arith.constant 0 : i32
    %c0_i32_1 = arith.constant 0 : i32
    return %arg0, %c0_i32, %c0_i32_0 : i32, i32, i32
  }
}

</mosaic_0001>

<bundles_post_ra>
// kernel: clip_vision_forward.1
= control target key start
LH: loop header
LB: loop body
LE: loop exit
PB: predicated region body
PF: predicated region fallthrough
CT: control target
= control target key end

     0   :  { %s3025_s0 = inlined_call_operand.vmem [shape: f32[2,8,192], index: 0, kind: input, shape index: {}]   ;;  %s3026_s1 = inlined_call_operand.vmem [shape: f32[8,32], index: 1, kind: input, shape index: {}]   ;;  %s3027_s2 = inlined_call_operand.vmem [shape: bf16[192,32], index: 2, kind: input, shape index: {}]   ;;  %s3028_s3 = inlined_call_operand.vmem [shape: f32[4,32], index: 3, kind: input, shape index: {}]   ;;  %s3029_s4 = inlined_call_operand.vmem [shape: bf16[2,32,96], index: 4, kind: input, shape index: {}]   ;;  %s3030_s5 = inlined_call_operand.vmem [shape: bf16[2,32,32], index: 5, kind: input, shape index: {}]   ;;  %s3031_s6 = inlined_call_operand.vmem [shape: bf16[2,32,128], index: 6, kind: input, shape index: {}]   ;;  %s3032_s7 = inlined_call_operand.vmem [shape: bf16[2,128,32], index: 7, kind: input, shape index: {}]   ;;  %s3033_s8 = inlined_call_operand.vmem [shape: f32[2,1,96], index: 8, kind: input, shape index: {}]   ;;  %s3034_s9 = inlined_call_operand.vmem [shape: f32[2,6,32], index: 9, kind: input, shape index: {}]   ;;  %s3035_s10 = inlined_call_operand.vmem [shape: f32[2,1,128], index: 10, kind: input, shape index: {}]   ;;  %s3036_s11 = inlined_call_operand.hbm [shape: f32[2,1,32], index: 11, kind: output, shape index: {0}]   ;;  %s3037_s12 = inlined_call_operand.hbm [shape: f32[2,8,32], index: 12, kind: output, shape index: {1}]  }
   0x1   :  { %3039 = sst [smem:[#allocation10_spill]] %s3025_s0 }
   0x2   :  { %18 = vsyncpa [#allocation3], 0 }
   0x3   :  { %20 = vsyncpa [#allocation3 + $0x1], 0 }
   0x4   :  { %21 = vsyncpa [#allocation5], 0 }
   0x5   :  { %23 = vsyncpa [#allocation5 + $0x1], 0  ;;  %s2534_s21 = smov 0   ;;  %s2536_s22 = smov 0  }
   0x6   :  { %s2538_s23 = smov 0   ;;  %s2540_s24 = smov 0  }
   0x7 LB: > { %3040 = sst [smem:[#allocation8_spill]] %s2454_s23  ;;  %s2555_s25 = sadd.s32 4294967295, %s2458_s24   ;;  %s2458_s24 = sphi %s2540_s24, %s3049_s24   ;;  %s2454_s23 = sphi %s2538_s23, %s3046_s23   ;;  %s2450_s22 = sphi %s2536_s22, %s3048_s22   ;;  %s2446_s21 = sphi %s2534_s21, %s3047_s21  }
   0x8   : > { %s1942_s26 = sadd.s32 4294967294, %s2458_s24   ;;  %s2559_s27 = sadd.s32 1, %s2458_s24  }
   0x9   : > { %s272_s28 = sadd.s32 1, %s2454_s23  ;;  %s269_s29 = ssub.s32 %s2458_s24, %s2559_s27 }
   0xa   : > { %p282_p0 = scmp.ne.s32.totalorder %s2454_s23, %s2450_s22  ;;  %p270_p1 = scmp.eq.s32.totalorder %s269_s29, 0 }
   0xb   : > { %p283_p2 = scmp.eq.s32.totalorder %s2555_s25, 1  ;;  %p288_p3 = scmp.ne.s32.totalorder %s2450_s22, %s2446_s21 }
   0xc   : > { %p289_p4 = scmp.eq.s32.totalorder %s1942_s26, 1  ;;  %p1945_p7 = scmp.ge.s32.totalorder %s2458_s24, 1 }
   0xd   : > { %s2570_s30 = scalar_select %p270_p1, %s2454_s23, %s272_s28  }
   0xe   : > { %p2572_p5 = por %p283_p2, %p282_p0  ;;  %p2576_p6 = por %p289_p4, %p288_p3 }
   0xf   : > { %3041 = sst [smem:[#allocation9_spill]] %s2570_s30  ;;  %p371_p8 = scmp.lt.s32.totalorder %s2458_s24, 3 }
  0x11   : > { %p372_p9 = pnand %p1945_p7, %p371_p8 }
  0x12   : > { %v2288_v0 = vld [vmem:[%s3027_s2] sm:$0xff] (!%p372_p9)   ;;  %v2460_v1 = vmov (!%p372_p9), 0   ;;  %p417_p10 = scmp.lt.s32.totalorder (!%p372_p9), %s2555_s25, 1  ;;  %v2289_v2 = vld [vmem:[%s3027_s2 + $0x8] sm:$0xff] (!%p372_p9)   ;;  %v2290_v3 = vld [vmem:[%s3027_s2 + $0x10] sm:$0xff] (!%p372_p9)   ;;  %s3044_s0 = sld [smem:[#allocation10_spill]] (!%p372_p9)  ;;  %v595_v49 = vlaneseq (!%p372_p9) }
  0x13   : > { %375 = sbr.rel (%p372_p9) target bundleno = 6163 (0x1813), region = 64  ;;  %528 = vmatprep.subr.bf16.mxu0 (!%p372_p9), %v2460_v1  ;;  %v2291_v4 = vld [vmem:[%s3027_s2 + $0x18] sm:$0xff] (!%p372_p9)   ;;  %v2292_v5 = vld [vmem:[%s3027_s2 + $0x20] sm:$0xff] (!%p372_p9)   ;;  %vm524_vm0 = vcmask (!%p372_p9), 523264   ;;  %v2293_v8 = vld [vmem:[%s3027_s2 + $0x28] sm:$0xff] (!%p372_p9)   ;;  %vm570_vm1 = vcmask (!%p372_p9), 261120  }
  0x14   : > { %529 = vmatpush1.bf16.msra.mxu0 (!%p372_p9), %v2288_v0  ;;  %v2294_v9 = vld [vmem:[%s3027_s2 + $0x30] sm:$0xff] (!%p372_p9)   ;;  %v2295_v10 = vld [vmem:[%s3027_s2 + $0x38] sm:$0xff] (!%p372_p9)   ;;  %v2296_v11 = vld [vmem:[%s3027_s2 + $0x40] sm:$0xff] (!%p372_p9)   ;;  %v2461_v45 = vmov (!%p372_p9), 0.0   ;;  %vm2462_vm2 = vmmov (!%p372_p9), 0   ;;  %v2658_v51 = vshrl.u32 (!%p372_p9), %v595_v49, 7 }
  0x15   : > { %530 = vmatprep.subr.bf16.mxu0 (!%p372_p9), %v2460_v1  ;;  %v2297_v12 = vld [vmem:[%s3027_s2 + $0x48] sm:$0xff] (!%p372_p9)   ;;  %v2298_v13 = vld [vmem:[%s3027_s2 + $0x50] sm:$0xff] (!%p372_p9)   ;;  %v2299_v14 = vld [vmem:[%s3027_s2 + $0x58] sm:$0xff] (!%p372_p9)   ;;  %2101 = vmatprep.subr.bf16.mxu1 (!%p372_p9), %v2461_v45  ;;  %s2463_s29 = smov (!%p372_p9), 112   ;;  %s2464_s15 = smov (!%p372_p9), 96   ;;  %vm723_vm3 = vcmask (!%p372_p9), 130048  }
  0x16   : > { %v451_v17 = vld [vmem:[%s3026_s1] sm:$0xff] (!%p372_p9)  ;;  %2105 = vmatprep.mubr.msk.bf16.mxu1 (!%p372_p9), %vm2462_vm2, %v2461_v45  ;;  %v2301_v46 = vld [vmem:[%s3029_s4 + $0x8] sm:$0xff] (!%p372_p9)   ;;  %v644_v52 = vsub.s32 (!%p372_p9), 0, %v2658_v51  ;;  %v649_v54 = vsub.s32 (!%p372_p9), 1, %v2658_v51  ;;  %vm823_vm5 = vcmask (!%p372_p9), 64512   ;;  %s2465_s17 = smov (!%p372_p9), 64  }
  0x17   : > { %v1962_v33 = vld [vmem:[%s3028_s3] ss:$0 sm:$0xff] (!%p372_p9)  ;;  %v1963_v35 = vld [vmem:[%s3028_s3 + $0x1] ss:$0 sm:$0xff] (!%p372_p9)  ;;  %vm853_vm6 = vcmask (!%p372_p9), 1043456   ;;  %s2466_s23 = smov (!%p372_p9), 16  }
  0x18   : > { %531 = vmatpush1.bf16.msra.mxu0 (!%p372_p9), %v2289_v2  ;;  %v2300_v44 = vld [vmem:[%s3029_s4] sm:$0xff] (!%p372_p9)   ;;  %vm1807_vm7 = vcmask (!%p372_p9), 253952   ;;  %s2045_s20 = sshll.u32 (!%p372_p9), %s2555_s25, 7 }
  0x19   : > { %532 = vmatprep.subr.bf16.mxu0 (!%p372_p9), %v2460_v1  ;;  %2102 = vmatpush3.bf16.msra.mxu1 (!%p372_p9), %v2300_v44  ;;  %v2664_v53 = vld [vmem:[%s3034_s9] sm:$0x3f] (!%p372_p9) }
  0x1a   : > { %s418_s19 = scalar_select %p417_p10, %s2555_s25, 1  ;;  %2103 = vmatprep.subr.bf16.mxu1 %v2461_v45  ;;  %v645_v55 = vrot.slane %v2664_v53, %v644_v52  ;;  %v650_v58 = vrot.slane %v2664_v53, %v649_v54  ;;  %v1964_v62 = vld [vmem:[%s3033_s8] ss:$0 sm:$0xff] }
  0x1c   : > { %s2048_s28 = sshll.u32 %s418_s19, 4  ;;  %533 = vmatpush1.bf16.msra.mxu0 %v2290_v3 }
  0x1d   : > { %s2596_s16 = scalar_lea.vmem %s3044_s0, %s2048_s28  ;;  %534 = vmatprep.subr.bf16.mxu0 %v2460_v1  ;;  %2104 = vmatpush3.bf16.msra.mxu1 %v2301_v46 }
  0x1e   : > { %v424_v6 = vld [vmem:[%s2596_s16 + $0x8] sm:$0xff]  ;;  %v423_v15 = vld [vmem:[%s2596_s16] sm:$0xff]  ;;  %2109 = vmatprep.subr.bf16.mxu1 %v2461_v45  ;;  %s2467_s16 = smov [#allocation4]  }
  0x1f   : > { %v450_v7 = vpack.c.bf16 %v424_v6, %v424_v6  ;;  %v449_v16 = vpack.c.bf16 %v423_v15, %v423_v15 }
  0x20   : > { %535 = vmatpush1.bf16.msra.mxu0 %v2291_v4 }
  0x21   : > { %536 = vmatprep.subr.bf16.mxu0 %v2460_v1  ;;  %1961 = vmatprep.mubr.msk.bf16.mxu0 %vm524_vm0, %v450_v7 }
  0x24   : > { %537 = vmatpush1.bf16.msra.mxu0 %v2292_v5 }
  0x25   : > { %538 = vmatprep.subr.bf16.mxu0 %v2460_v1 }
  0x28   : > { %539 = vmatpush1.bf16.msra.mxu0 %v2293_v8 }
  0x29   : > { %540 = vmatprep.subr.bf16.mxu0 %v2460_v1 }
  0x2c   : > { %541 = vmatpush1.bf16.msra.mxu0 %v2294_v9 }
  0x2d   : > { %542 = vmatprep.subr.bf16.mxu0 %v2460_v1 }
  0x30   : > { %543 = vmatpush1.bf16.msra.mxu0 %v2295_v10 }
  0x31   : > { %544 = vmatprep.subr.bf16.mxu0 %v2460_v1 }
  0x34   : > { %545 = vmatpush1.bf16.msra.mxu0 %v2296_v11  ;;  %v2692_v11 = vand.u32 127, %v595_v49 }
  0x35   : > { %546 = vmatprep.subr.bf16.mxu0 %v2460_v1 }
  0x36   : > { %vm597_vm4 = vcmp.lt.s32.totalorder %v2692_v11, 5 }
  0x38   : > { %547 = vmatpush1.bf16.msra.mxu0 %v2297_v12 }
  0x39   : > { %548 = vmatprep.subr.bf16.mxu0 %v2460_v1 }
  0x3c   : > { %549 = vmatpush1.bf16.msra.mxu0 %v2298_v13 }
  0x3d   : > { %550 = vmatprep.subr.bf16.mxu0 %v2460_v1 }
  0x40   : > { %551 = vmatpush1.bf16.msra.mxu0 %v2299_v14 }
  0x41   : > { %2177 = vmatprep.subr.bf16.mxu0 %v2461_v45 }
  0x43   : > { %561 = vmatmul.mubr.bf16.vlgmr.msra.gmra.mrb[0].mxu0 %v449_v16 }
  0x44   : > { %2179 = vmatprep.mubr.msk.bf16.mxu0 %vm2462_vm2, %v2461_v45 }
 0x116   : > { %v562_v18 = vpop.f32.mrb[0].mxu0 }
 0x117   : > { %v563_v19 = vadd.f32 %v562_v18, %v451_v17  ;;  %v564_v20 = vpop.f32.mrb[1].mxu0 }
 0x118   : > { %v565_v21 = vpop.f32.mrb[2].mxu0 }
 0x119   : > { %v566_v22 = vpop.f32.mrb[3].mxu0  ;;  %v571_v23 = vsel %vm570_vm1, %v563_v19, 0.0 }
 0x11a   : > { %572 = vadd.xlane.f32.xlu0 %v571_v23 }
 0x1a7   : > { %v573_v24 = vpop.xlane.xlu0 %572 }
 0x1a8   : > { %v575_v25 = vmul.f32 0.03125, %v573_v24 }
 0x1aa   : > { %v576_v26 = vsub.f32 %v563_v19, %v575_v25 }
 0x1ac   : > { %v577_v27 = vmul.f32 %v576_v26, %v576_v26 }
 0x1ae   : > { %v578_v28 = vsel %vm570_vm1, %v577_v27, 0.0 }
 0x1af   : > { %579 = vadd.xlane.f32.xlu0 %v578_v28 }
 0x23c   : > { %v580_v29 = vpop.xlane.xlu0 %579 }
 0x23d   : > { %v581_v30 = vmul.f32 0.03125, %v580_v29 }
 0x23f   : > { %v582_v31 = vadd.f32 1e-05, %v581_v30 }
 0x241   : > { %2328 = vrsqrt.f32 %v582_v31 }
 0x24b   : > { %v2329_v32 = vpop.eup %2328 }
 0x24c   : > { %v584_v34 = vmul.f32 %v2329_v32, %v576_v26 }
 0x24e   : > { %v589_v36 = vmul.f32 %v1962_v33, %v584_v34 }
 0x250   : > { %v2638_v37 = vadd.f32 %v1963_v35, %v589_v36 }
 0x252   : > { %v629_v38 = vsel %vm570_vm1, %v2638_v37, 0.0 }
 0x253   : > { %630 = vadd.xlane.f32.xlu1 %v629_v38 }
 0x2e0   : > { %v631_v39 = vpop.xlane.xlu1 %630 }
 0x2e1   : > { %v632_v40 = vmul.f32 0.03125, %v631_v39 }
 0x2e3   : > { %v633_v41 = vsub.f32 %v2638_v37, %v632_v40 }
 0x2e5   : > { %v634_v42 = vmul.f32 %v633_v41, %v633_v41 }
 0x2e7   : > { %v635_v43 = vsel %vm570_vm1, %v634_v42, 0.0 }
 0x2e8   : > { %636 = vadd.xlane.f32.xlu1 %v635_v43 }
 0x375   : > { %v637_v47 = vpop.xlane.xlu1 %636 }
 0x376   : > { %v638_v48 = vmul.f32 0.03125, %v637_v47 }
 0x378   : > { %v639_v50 = vadd.f32 1e-05, %v638_v48  ;;  %v2302_v48 = vld [vmem:[%s3030_s5] sm:$0xff]  }
 0x37a   : > { %2330 = vrsqrt.f32 %v639_v50 }
 0x384   : > { %v2331_v56 = vpop.eup %2330 }
 0x385   : > { %v641_v57 = vmul.f32 %v2331_v56, %v633_v41 }
 0x387   : > { %v646_v59 = vmul.f32 %v645_v55, %v641_v57  ;;  %v2303_v57 = vld [vmem:[%s3030_s5 + $0x8] sm:$0xff]  }
 0x389   : > { %v651_v60 = vadd.f32 %v650_v58, %v646_v59 }
 0x38b   : > { %v652_v61 = vpack.c.bf16 %v651_v60, %v651_v60 }
 0x38d   : > { %2106 = vmatmul.mubr.msk.bf16.vlgmr.msra.gmra.mrb[0].mxu1 %vm570_vm1, %v652_v61 }
 0x38e   : > { %2111 = vmatprep.mubr.msk.bf16.mxu1 %vm2462_vm2, %v2461_v45 }
 0x460   : > { %v708_v63 = vpop.f32.mrb[0].mxu1 }
 0x461   : > { %v709_v0 = vadd.f32 %v1964_v62, %v708_v63  ;;  %v2107_v1 = vpop.f32.mrb[1].mxu1 }
 0x462   : > { %v711_v2 = vpop.f32.mrb[2].mxu1  ;;  %v1009_v1 = vsub.s32 2, %v2658_v51 }
 0x463   : > { %v718_v3 = vpack.c.bf16 %v709_v0, %v709_v0  ;;  %715 = vrot.lane.b32.xlu0 %v709_v0, %s2463_s29  ;;  %v2108_v4 = vpop.f32.mrb[3].mxu1 }
 0x464   : > { %v1010_v2 = vrot.slane %v2664_v53, %v1009_v1 }
 0x465   : > { %721 = vrot.lane.b32.xlu1 %v718_v3, %s2464_s15 }
 0x4d5   : > { %v716_v5 = vpop.permute.xlu0 %715 }
 0x4d6   : > { %v719_v6 = vpack.c.bf16 %v716_v5, %v716_v5 }
 0x4d7   : > { %v722_v7 = vpop.permute.xlu1 %721 }
 0x4d8   : > { %v728_v8 = vsel %vm723_vm3, %v722_v7, 0  ;;  %771 = vrot.lane.b32.xlu1 %v719_v6, %s2464_s15 }
 0x4d9   : > { %2110 = vmatpush3.bf16.xpose.msra.mxu1 %v728_v8 }
 0x4da   : > { %2115 = vmatprep.subr.bf16.mxu1 %v2461_v45 }
 0x4e0   : > { %2112 = vmatmul.mubr.msk.bf16.vlgmr.msra.gmra.mrb[4].mxu1 %vm723_vm3, %v718_v3 }
 0x4e1   : > { %2117 = vmatprep.mubr.msk.bf16.mxu1 %vm2462_vm2, %v2461_v45 }
 0x54a   : > { %v772_v9 = vpop.permute.xlu1 %771 }
 0x54b   : > { %v777_v10 = vsel %vm723_vm3, %v772_v9, 0 }
 0x54c   : > { %2116 = vmatpush3.bf16.xpose.msra.mxu1 %v777_v10 }
 0x54d   : > { %2121 = vmatprep.subr.bf16.mxu1 %v2461_v45 }
 0x553   : > { %2118 = vmatmul.mubr.msk.bf16.vlgmr.msra.gmra.mrb[8].mxu1 %vm723_vm3, %v719_v6 }
 0x554   : > { %2123 = vmatprep.mubr.msk.bf16.mxu1 %vm2462_vm2, %v2461_v45 }
 0x5b3   : > { %v764_v12 = vpop.f32.mrb[4].mxu1 }
 0x5b4   : > { %v821_v13 = vsel %vm597_vm4, %v764_v12, -1e+30  ;;  %v2113_v14 = vpop.f32.mrb[5].mxu1 }
 0x5b5   : > { %v767_v15 = vpop.f32.mrb[6].mxu1  ;;  %v824_v16 = vsel %vm823_vm5, %v821_v13, -inf }
 0x5b6   : > { %825 = vmax.xlane.f32.xlu1 %v824_v16  ;;  %v2114_v17 = vpop.f32.mrb[7].mxu1  ;;  %v2305_v16 = vld [vmem:[%s3031_s6 + $0x8] sm:$0xff]  }
 0x5c7   : > { %848 = vrot.lane.b32.xlu1 %v718_v3, %s2465_s17 }
 0x626   : > { %v813_v18 = vpop.f32.mrb[8].mxu1 }
 0x627   : > { %v822_v19 = vsel %vm597_vm4, %v813_v18, -1e+30  ;;  %v2119_v20 = vpop.f32.mrb[9].mxu1 }
 0x628   : > { %v816_v21 = vpop.f32.mrb[10].mxu1  ;;  %v827_v22 = vsel %vm823_vm5, %v822_v19, -inf  ;;  %v1027_v20 = vsub.s32 3, %v2658_v51 }
 0x629   : > { %828 = vmax.xlane.f32.xlu0 %v827_v22  ;;  %v2120_v23 = vpop.f32.mrb[11].mxu1  ;;  %v1032_v21 = vsub.s32 4, %v2658_v51 }
 0x62a   : > { %v1028_v22 = vrot.slane %v2664_v53, %v1027_v20 }
 0x643   : > { %v826_v24 = vpop.xlane.xlu1 %825 }
 0x644   : > { %v830_v25 = vsub.f32 %v821_v13, %v826_v24 }
 0x646   : > { %v832_v26 = vmul.f32 1.442695, %v830_v25  ;;  %v1033_v25 = vrot.slane %v2664_v53, %v1032_v21 }
 0x647   : > { %v849_v27 = vpop.permute.xlu1 %848 }
 0x648   : > { %2332 = vpow2.f32 %v832_v26  ;;  %v855_v28 = vsel %vm853_vm6, %v849_v27, 0 }
 0x649   : > { %2122 = vmatpush3.bf16.msra.mxu1 %v855_v28 }
 0x64a   : > { %2127 = vmatprep.subr.bf16.mxu1 %v2461_v45 }
 0x652   : > { %v2333_v29 = vpop.eup %2332 }
 0x653   : > { %v836_v30 = vsel %vm823_vm5, %v2333_v29, 0.0 }
 0x654   : > { %837 = vadd.xlane.f32.xlu0 %v836_v30  ;;  %v2307_v30 = vld [vmem:[%s3032_s7 + $0x8] sm:$0xff]  }
 0x6b6   : > { %v829_v31 = vpop.xlane.xlu0 %828 }
 0x6b7   : > { %v831_v32 = vsub.f32 %v822_v19, %v829_v31  ;;  %v2308_v31 = vld [vmem:[%s3032_s7 + $0x10] sm:$0xff]  }
 0x6b9   : > { %v834_v33 = vmul.f32 1.442695, %v831_v32  ;;  %v2309_v32 = vld [vmem:[%s3032_s7 + $0x18] sm:$0xff]  }
 0x6bb   : > { %2334 = vpow2.f32 %v834_v33  ;;  %v2310_v33 = vld [vmem:[%s3032_s7 + $0x20] sm:$0xff]  }
 0x6c5   : > { %v2335_v34 = vpop.eup %2334 }
 0x6c6   : > { %v839_v35 = vsel %vm823_vm5, %v2335_v34, 0.0 }
 0x6c7   : > { %840 = vadd.xlane.f32.xlu0 %v839_v35  ;;  %v2312_v35 = vld [vmem:[%s3032_s7 + $0x30] sm:$0xff]  }
 0x6dd   : > { %897 = vrot.lane.b32.xlu0 %v719_v6, %s2465_s17 }
 0x6e1   : > { %v838_v36 = vpop.xlane.xlu0 %837 }
 0x6e2   : > { %2336 = vrcp.f32 %v838_v36  ;;  %v2313_v36 = vld [vmem:[%s3032_s7 + $0x38] sm:$0xff]  }
 0x6ec   : > { %v2337_v38 = vpop.eup %2336 }
 0x6ed   : > { %v844_v39 = vmul.f32 %v2337_v38, %v2333_v29  ;;  %v2306_v29 = vld [vmem:[%s3032_s7] sm:$0xff]  }
 0x6ee   : > { %v1975_v38 = vld [vmem:[%s3035_s10] ss:$0 sm:$0xff] }
 0x6ef   : > { %v846_v40 = vpack.c.bf16 %v844_v39, %v844_v39 }
 0x6f1   : > { %2124 = vmatmul.mubr.msk.bf16.vlgmr.msra.gmra.mrb[12].mxu1 %vm823_vm5, %v846_v40 }
 0x6f2   : > { %2129 = vmatprep.mubr.msk.bf16.mxu1 %vm2462_vm2, %v2461_v45 }
 0x754   : > { %v841_v41 = vpop.xlane.xlu0 %840 }
 0x755   : > { %2338 = vrcp.f32 %v841_v41 }
 0x758   : > { %v898_v42 = vpop.permute.xlu0 %897 }
 0x759   : > { %v903_v43 = vsel %vm853_vm6, %v898_v42, 0 }
 0x75a   : > { %2128 = vmatpush3.bf16.msra.mxu1 %v903_v43 }
 0x75b   : > { %2133 = vmatprep.subr.bf16.mxu1 %v2461_v45 }
 0x75f   : > { %v2339_v44 = vpop.eup %2338 }
 0x760   : > { %v845_v46 = vmul.f32 %v2339_v44, %v2335_v34  ;;  %v2311_v34 = vld [vmem:[%s3032_s7 + $0x28] sm:$0xff]  }
 0x762   : > { %v847_v47 = vpack.c.bf16 %v845_v46, %v845_v46 }
 0x764   : > { %2130 = vmatmul.mubr.msk.bf16.vlgmr.msra.gmra.mrb[16].mxu1 %vm823_vm5, %v847_v47 }
 0x765   : > { %2137 = vmatprep.mubr.msk.bf16.mxu1 %vm2462_vm2, %v2461_v45  ;;  %2134 = vmatpush3.bf16.msra.mxu1 %v2302_v48 }
 0x766   : > { %2135 = vmatprep.subr.bf16.mxu1 %v2461_v45 }
 0x769   : > { %2136 = vmatpush3.bf16.msra.mxu1 %v2303_v57 }
 0x76a   : > { %2141 = vmatprep.subr.bf16.mxu1 %v2461_v45 }
 0x7c4   : > { %v891_v49 = vpop.f32.mrb[12].mxu1 }
 0x7c5   : > { %v2125_v50 = vpop.f32.mrb[13].mxu1 }
 0x7c6   : > { %v894_v55 = vpop.f32.mrb[14].mxu1 }
 0x7c7   : > { %v2126_v56 = vpop.f32.mrb[15].mxu1 }
 0x7c8   : > { %v1197_v56 = vsub.s32 5, %v2658_v51 }
 0x7ca   : > { %v1198_v57 = vrot.slane %v2664_v53, %v1197_v56  ;;  %v2314_v53 = vld [vmem:[%s3029_s4 + $0x10] sm:$0xff]  }
 0x837   : > { %v939_v58 = vpop.f32.mrb[16].mxu1 }
 0x838   : > { %946 = vrot.lane.b32.xlu1 %v939_v58, %s2466_s23  ;;  %v2131_v59 = vpop.f32.mrb[17].mxu1 }
 0x839   : > { %v942_v60 = vpop.f32.mrb[18].mxu1 }
 0x83a   : > { %v2132_v61 = vpop.f32.mrb[19].mxu1 }
 0x8aa   : > { %v947_v62 = vpop.permute.xlu1 %946 }
 0x8ab   : > { %v949_v63 = vsel %vm723_vm3, %v891_v49, %v947_v62 }
 0x8ac   : > { %v950_v0 = vpack.c.bf16 %v949_v63, %v949_v63 }
 0x8ae   : > { %2138 = vmatmul.mubr.msk.bf16.vlgmr.msra.gmra.mrb[20].mxu1 %vm570_vm1, %v950_v0 }
 0x8af   : > { %2145 = vmatprep.mubr.msk.bf16.mxu1 %vm2462_vm2, %v2461_v45 }
 0x981   : > { %v1000_v3 = vpop.f32.mrb[20].mxu1 }
 0x982   : > { %v1006_v4 = vadd.f32 %v1000_v3, %v2638_v37  ;;  %v2139_v5 = vpop.f32.mrb[21].mxu1  ;;  %v2304_v37 = vld [vmem:[%s3031_s6] sm:$0xff]  }
 0x983   : > { %v1003_v6 = vpop.f32.mrb[22].mxu1  ;;  %2142 = vmatpush3.bf16.msra.mxu1 %v2304_v37 }
 0x984   : > { %v2733_v7 = vadd.f32 %v1010_v2, %v1006_v4  ;;  %v2140_v8 = vpop.f32.mrb[23].mxu1  ;;  %2143 = vmatprep.subr.bf16.mxu1 %v2461_v45 }
 0x986   : > { %v1012_v9 = vsel %vm570_vm1, %v2733_v7, 0.0 }
 0x987   : > { %1013 = vadd.xlane.f32.xlu1 %v1012_v9  ;;  %2144 = vmatpush3.bf16.msra.mxu1 %v2305_v16 }
 0x988   : > { %2149 = vmatprep.subr.bf16.mxu1 %v2461_v45 }
 0xa14   : > { %v1014_v10 = vpop.xlane.xlu1 %1013 }
 0xa15   : > { %v1015_v12 = vmul.f32 0.03125, %v1014_v10 }
 0xa17   : > { %v1016_v13 = vsub.f32 %v2733_v7, %v1015_v12  ;;  %v2817_v12 = vld [vmem:[%s3034_s9 + $0x8] sm:$0x3f] }
 0xa19   : > { %v1017_v14 = vmul.f32 %v1016_v13, %v1016_v13 }
 0xa1b   : > { %v1018_v15 = vsel %vm570_vm1, %v1017_v14, 0.0 }
 0xa1c   : > { %1019 = vadd.xlane.f32.xlu0 %v1018_v15  ;;  %v1259_v15 = vrot.slane %v2817_v12, %v649_v54 }
 0xaa9   : > { %v1020_v17 = vpop.xlane.xlu0 %1019 }
 0xaaa   : > { %v1021_v18 = vmul.f32 0.03125, %v1020_v17 }
 0xaac   : > { %v1022_v19 = vadd.f32 1e-05, %v1021_v18 }
 0xaae   : > { %2340 = vrsqrt.f32 %v1022_v19  ;;  %v2019_v19 = vld [vmem:[%s3033_s8 + $0x1] ss:$0 sm:$0xff] }
 0xab8   : > { %v2341_v23 = vpop.eup %2340 }
 0xab9   : > { %v1024_v24 = vmul.f32 %v2341_v23, %v1016_v13  ;;  %v1254_v13 = vrot.slane %v2817_v12, %v644_v52 }
 0xabb   : > { %v1029_v26 = vmul.f32 %v1028_v22, %v1024_v24 }
 0xabd   : > { %v1034_v27 = vadd.f32 %v1033_v25, %v1029_v26 }
 0xabf   : > { %v1035_v28 = vpack.c.bf16 %v1034_v27, %v1034_v27 }
 0xac1   : > { %2146 = vmatmul.mubr.msk.bf16.vlgmr.msra.gmra.mrb[24].mxu1 %vm570_vm1, %v1035_v28 }
 0xac2   : > { %2165 = vmatprep.mubr.msk.bf16.mxu1 %vm2462_vm2, %v2461_v45  ;;  %2150 = vmatpush3.bf16.msra.mxu1 %v2306_v29 }
 0xac3   : > { %2151 = vmatprep.subr.bf16.mxu1 %v2461_v45 }
 0xac6   : > { %2152 = vmatpush3.bf16.msra.mxu1 %v2307_v30 }
 0xac7   : > { %2153 = vmatprep.subr.bf16.mxu1 %v2461_v45 }
 0xaca   : > { %2154 = vmatpush3.bf16.msra.mxu1 %v2308_v31 }
 0xacb   : > { %2155 = vmatprep.subr.bf16.mxu1 %v2461_v45 }
 0xace   : > { %2156 = vmatpush3.bf16.msra.mxu1 %v2309_v32 }
 0xacf   : > { %2157 = vmatprep.subr.bf16.mxu1 %v2461_v45 }
 0xad2   : > { %2158 = vmatpush3.bf16.msra.mxu1 %v2310_v33 }
 0xad3   : > { %2159 = vmatprep.subr.bf16.mxu1 %v2461_v45 }
 0xad6   : > { %2160 = vmatpush3.bf16.msra.mxu1 %v2311_v34 }
 0xad7   : > { %2161 = vmatprep.subr.bf16.mxu1 %v2461_v45 }
 0xada   : > { %2162 = vmatpush3.bf16.msra.mxu1 %v2312_v35 }
 0xadb   : > { %2163 = vmatprep.subr.bf16.mxu1 %v2461_v45 }
 0xade   : > { %2164 = vmatpush3.bf16.msra.mxu1 %v2313_v36 }
 0xadf   : > { %2169 = vmatprep.subr.bf16.mxu1 %v2461_v45 }
 0xb94   : > { %v1091_v39 = vpop.f32.mrb[24].mxu1 }
 0xb95   : > { %v1092_v40 = vadd.f32 %v1975_v38, %v1091_v39  ;;  %v2147_v41 = vpop.f32.mrb[25].mxu1 }
 0xb96   : > { %v1094_v42 = vpop.f32.mrb[26].mxu1 }
 0xb97   : > { %v1979_v43 = vmul.f32 -1.702, %v1092_v40  ;;  %v2148_v44 = vpop.f32.mrb[27].mxu1 }
 0xb99   : > { %v1099_v46 = vmul.f32 1.442695, %v1979_v43 }
 0xb9b   : > { %2342 = vpow2.f32 %v1099_v46 }
 0xba5   : > { %v2343_v47 = vpop.eup %2342 }
 0xba6   : > { %v1101_v48 = vadd.f32 1.0, %v2343_v47 }
 0xba8   : > { %2344 = vrcp.f32 %v1101_v48 }
 0xbb2   : > { %v2345_v49 = vpop.eup %2344 }
 0xbb3   : > { %v1104_v50 = vmul.f32 %v2345_v49, %v1092_v40 }
 0xbb5   : > { %v1105_v55 = vpack.c.bf16 %v1104_v50, %v1104_v50 }
 0xbb7   : > { %2166 = vmatmul.mubr.bf16.vlgmr.msra.gmra.mrb[28].mxu1 %v1105_v55 }
 0xbb8   : > { %2173 = vmatprep.mubr.msk.bf16.mxu1 %vm2462_vm2, %v2461_v45  ;;  %2170 = vmatpush3.bf16.msra.mxu1 %v2314_v53 }
 0xbb9   : > { %2171 = vmatprep.subr.bf16.mxu1 %v2461_v45 }
 0xc8a   : > { %v1188_v58 = vpop.f32.mrb[28].mxu1 }
 0xc8b   : > { %v1194_v59 = vadd.f32 %v1188_v58, %v2733_v7  ;;  %v2167_v60 = vpop.f32.mrb[29].mxu1  ;;  %v2315_v7 = vld [vmem:[%s3029_s4 + $0x18] sm:$0xff]  }
 0xc8c   : > { %v1191_v61 = vpop.f32.mrb[30].mxu1  ;;  %2172 = vmatpush3.bf16.msra.mxu1 %v2315_v7 }
 0xc8d   : > { %v2800_v62 = vadd.f32 %v1198_v57, %v1194_v59  ;;  %v2168_v63 = vpop.f32.mrb[31].mxu1  ;;  %2195 = vmatprep.subr.bf16.mxu1 %v2461_v45 }
 0xc8f   : > { %v1238_v0 = vsel %vm570_vm1, %v2800_v62, 0.0 }
 0xc90   : > { %1239 = vadd.xlane.f32.xlu0 %v1238_v0 }
 0xd1d   : > { %v1240_v2 = vpop.xlane.xlu0 %1239 }
 0xd1e   : > { %v1241_v3 = vmul.f32 0.03125, %v1240_v2 }
 0xd20   : > { %v1242_v4 = vsub.f32 %v2800_v62, %v1241_v3 }
 0xd22   : > { %v1243_v5 = vmul.f32 %v1242_v4, %v1242_v4 }
 0xd24   : > { %v1244_v6 = vsel %vm570_vm1, %v1243_v5, 0.0 }
 0xd25   : > { %1245 = vadd.xlane.f32.xlu1 %v1244_v6 }
 0xdb2   : > { %v1246_v8 = vpop.xlane.xlu1 %1245 }
 0xdb3   : > { %v1247_v9 = vmul.f32 0.03125, %v1246_v8 }
 0xdb5   : > { %v1248_v10 = vadd.f32 1e-05, %v1247_v9  ;;  %v2316_v9 = vld [vmem:[%s3030_s5 + $0x10] sm:$0xff]  }
 0xdb7   : > { %2346 = vrsqrt.f32 %v1248_v10 }
 0xdc1   : > { %v2347_v14 = vpop.eup %2346 }
 0xdc2   : > { %v1250_v37 = vmul.f32 %v2347_v14, %v1242_v4 }
 0xdc4   : > { %v1255_v16 = vmul.f32 %v1254_v13, %v1250_v37  ;;  %v2317_v37 = vld [vmem:[%s3030_s5 + $0x18] sm:$0xff]  }
 0xdc6   : > { %v1260_v17 = vadd.f32 %v1259_v15, %v1255_v16 }
 0xdc8   : > { %v1261_v18 = vpack.c.bf16 %v1260_v17, %v1260_v17 }
 0xdca   : > { %2174 = vmatmul.mubr.msk.bf16.vlgmr.msra.gmra.mrb[32].mxu1 %vm570_vm1, %v1261_v18 }
 0xdcb   : > { %2197 = vmatprep.mubr.msk.bf16.mxu1 %vm2462_vm2, %v2461_v45 }
 0xe9d   : > { %v1317_v22 = vpop.f32.mrb[32].mxu1 }
 0xe9e   : > { %v1318_v52 = vadd.f32 %v2019_v19, %v1317_v22  ;;  %v2175_v23 = vpop.f32.mrb[33].mxu1 }
 0xe9f   : > { %v1320_v24 = vpop.f32.mrb[34].mxu1 }
 0xea0   : > { %v1327_v25 = vpack.c.bf16 %v1318_v52, %v1318_v52  ;;  %1324 = vrot.lane.b32.xlu0 %v1318_v52, %s2463_s29  ;;  %v2176_v54 = vpop.f32.mrb[35].mxu1  ;;  %v1614_v24 = vrot.slane %v2817_v12, %v1009_v1  ;;  %v2318_v1 = vld [vmem:[%s3031_s6 + $0x10] sm:$0xff]   ;;  %s2950_s29 = scalar_lea.hbm %s3037_s12, %s2045_s20 }
 0xea2   : > { %1330 = vrot.lane.b32.xlu1 %v1327_v25, %s2464_s15 }
 0xf12   : > { %v1325_v26 = vpop.permute.xlu0 %1324 }
 0xf13   : > { %v1328_v27 = vpack.c.bf16 %v1325_v26, %v1325_v26 }
 0xf14   : > { %v1331_v28 = vpop.permute.xlu1 %1330 }
 0xf15   : > { %v1336_v29 = vsel %vm723_vm3, %v1331_v28, 0  ;;  %1379 = vrot.lane.b32.xlu1 %v1328_v27, %s2464_s15 }
 0xf16   : > { %2178 = vmatpush3.bf16.xpose.msra.mxu0 %v1336_v29 }
 0xf17   : > { %2183 = vmatprep.subr.bf16.mxu0 %v2461_v45 }
 0xf1d   : > { %2180 = vmatmul.mubr.msk.bf16.vlgmr.msra.gmra.mrb[4].mxu0 %vm723_vm3, %v1327_v25 }
 0xf1e   : > { %2185 = vmatprep.mubr.msk.bf16.mxu0 %vm2462_vm2, %v2461_v45 }
 0xf87   : > { %v1380_v30 = vpop.permute.xlu1 %1379 }
 0xf88   : > { %v1385_v31 = vsel %vm723_vm3, %v1380_v30, 0 }
 0xf89   : > { %2184 = vmatpush3.bf16.xpose.msra.mxu0 %v1385_v31 }
 0xf8a   : > { %2189 = vmatprep.subr.bf16.mxu0 %v2461_v45 }
 0xf90   : > { %2186 = vmatmul.mubr.msk.bf16.vlgmr.msra.gmra.mrb[8].mxu0 %vm723_vm3, %v1328_v27 }
 0xf91   : > { %2191 = vmatprep.mubr.msk.bf16.mxu0 %vm2462_vm2, %v2461_v45 }
 0xff0   : > { %v1372_v32 = vpop.f32.mrb[4].mxu0 }
 0xff1   : > { %v1427_v33 = vsel %vm597_vm4, %v1372_v32, -1e+30  ;;  %v2181_v34 = vpop.f32.mrb[5].mxu0 }
 0xff2   : > { %v1375_v35 = vpop.f32.mrb[6].mxu0  ;;  %v1429_v36 = vsel %vm823_vm5, %v1427_v33, -inf }
 0xff3   : > { %1430 = vmax.xlane.f32.xlu0 %v1429_v36  ;;  %v2182_v38 = vpop.f32.mrb[7].mxu0 }
0x1063   : > { %v1421_v39 = vpop.f32.mrb[8].mxu0 }
0x1064   : > { %v1428_v40 = vsel %vm597_vm4, %v1421_v39, -1e+30  ;;  %v2187_v41 = vpop.f32.mrb[9].mxu0 }
0x1065   : > { %v1424_v42 = vpop.f32.mrb[10].mxu0  ;;  %v1432_v43 = vsel %vm823_vm5, %v1428_v40, -inf }
0x1066   : > { %1433 = vmax.xlane.f32.xlu1 %v1432_v43  ;;  %v2188_v44 = vpop.f32.mrb[11].mxu0  ;;  %v1637_v43 = vrot.slane %v2817_v12, %v1032_v21  ;;  %v2322_v21 = vld [vmem:[%s3032_s7 + $0x50] sm:$0xff]  }
0x1080   : > { %v1431_v46 = vpop.xlane.xlu0 %1430 }
0x1081   : > { %v1435_v47 = vsub.f32 %v1427_v33, %v1431_v46 }
0x1083   : > { %v1437_v48 = vmul.f32 1.442695, %v1435_v47 }
0x1085   : > { %2348 = vpow2.f32 %v1437_v48  ;;  %v2320_v48 = vld [vmem:[%s3032_s7 + $0x40] sm:$0xff]  }
0x108f   : > { %v2349_v49 = vpop.eup %2348 }
0x1090   : > { %v1441_v50 = vsel %vm823_vm5, %v2349_v49, 0.0 }
0x1091   : > { %1442 = vadd.xlane.f32.xlu1 %v1441_v50  ;;  %v2324_v50 = vld [vmem:[%s3032_s7 + $0x60] sm:$0xff]  }
0x10a2   : > { %1453 = vrot.lane.b32.xlu1 %v1327_v25, %s2465_s17 }
0x10f3   : > { %v1434_v55 = vpop.xlane.xlu1 %1433 }
0x10f4   : > { %v1436_v57 = vsub.f32 %v1428_v40, %v1434_v55  ;;  %v1632_v40 = vrot.slane %v2817_v12, %v1027_v20  ;;  %v2321_v20 = vld [vmem:[%s3032_s7 + $0x48] sm:$0xff]  }
0x10f5   : > { %v2325_v55 = vld [vmem:[%s3032_s7 + $0x68] sm:$0xff]  }
0x10f6   : > { %v1439_v11 = vmul.f32 1.442695, %v1436_v57  ;;  %v2326_v57 = vld [vmem:[%s3032_s7 + $0x70] sm:$0xff]  }
0x10f8   : > { %2350 = vpow2.f32 %v1439_v11  ;;  %v2327_v11 = vld [vmem:[%s3032_s7 + $0x78] sm:$0xff]  }
0x1102   : > { %v2351_v58 = vpop.eup %2350 }
0x1103   : > { %v1444_v59 = vsel %vm823_vm5, %v2351_v58, 0.0 }
0x1104   : > { %1445 = vadd.xlane.f32.xlu0 %v1444_v59 }
0x111a   : > { %1501 = vrot.lane.b32.xlu0 %v1328_v27, %s2465_s17 }
0x111e   : > { %v1443_v60 = vpop.xlane.xlu1 %1442 }
0x111f   : > { %2352 = vrcp.f32 %v1443_v60 }
0x1122   : > { %v1454_v61 = vpop.permute.xlu1 %1453 }
0x1123   : > { %v1459_v63 = vsel %vm853_vm6, %v1454_v61, 0 }
0x1124   : > { %2190 = vmatpush3.bf16.msra.mxu0 %v1459_v63 }
0x1125   : > { %2201 = vmatprep.subr.bf16.mxu0 %v2461_v45 }
0x1129   : > { %v2353_v0 = vpop.eup %2352 }
0x112a   : > { %v1449_v2 = vmul.f32 %v2353_v0, %v2349_v49  ;;  %v2323_v49 = vld [vmem:[%s3032_s7 + $0x58] sm:$0xff]  }
0x112c   : > { %v1451_v3 = vpack.c.bf16 %v1449_v2, %v1449_v2 }
0x112e   : > { %2192 = vmatmul.mubr.msk.bf16.vlgmr.msra.gmra.mrb[12].mxu0 %vm823_vm5, %v1451_v3 }
0x112f   : > { %2205 = vmatprep.mubr.msk.bf16.mxu0 %vm2462_vm2, %v2461_v45  ;;  %2202 = vmatpush3.bf16.msra.mxu0 %v2316_v9 }
0x1130   : > { %2203 = vmatprep.subr.bf16.mxu0 %v2461_v45 }
0x1133   : > { %2204 = vmatpush3.bf16.msra.mxu0 %v2317_v37 }
0x1134   : > { %2217 = vmatprep.subr.bf16.mxu0 %v2461_v45 }
0x1191   : > { %v1446_v4 = vpop.xlane.xlu0 %1445 }
0x1192   : > { %2354 = vrcp.f32 %v1446_v4 }
0x1195   : > { %v1502_v5 = vpop.permute.xlu0 %1501 }
0x1196   : > { %v1507_v6 = vsel %vm853_vm6, %v1502_v5, 0 }
0x1197   : > { %2196 = vmatpush3.bf16.msra.mxu1 %v1507_v6 }
0x1198   : > { %2209 = vmatprep.subr.bf16.mxu1 %v2461_v45 }
0x119c   : > { %v2355_v53 = vpop.eup %2354 }
0x119d   : > { %v1450_v7 = vmul.f32 %v2355_v53, %v2351_v58  ;;  %v2030_v58 = vld [vmem:[%s3035_s10 + $0x1] ss:$0 sm:$0xff] }
0x119f   : > { %v1452_v8 = vpack.c.bf16 %v1450_v7, %v1450_v7  ;;  %v1802_v7 = vrot.slane %v2817_v12, %v1197_v56 }
0x11a1   : > { %2198 = vmatmul.mubr.msk.bf16.vlgmr.msra.gmra.mrb[36].mxu1 %vm823_vm5, %v1452_v8 }
0x11a2   : > { %2213 = vmatprep.mubr.msk.bf16.mxu1 %vm2462_vm2, %v2461_v45  ;;  %2210 = vmatpush3.bf16.msra.mxu1 %v2318_v1 }
0x11a3   : > { %2211 = vmatprep.subr.bf16.mxu1 %v2461_v45 }
0x1201   : > { %v1495_v10 = vpop.f32.mrb[12].mxu0 }
0x1202   : > { %v2193_v13 = vpop.f32.mrb[13].mxu0 }
0x1203   : > { %v1498_v14 = vpop.f32.mrb[14].mxu0 }
0x1204   : > { %v2194_v15 = vpop.f32.mrb[15].mxu0 }
0x1274   : > { %v1543_v16 = vpop.f32.mrb[36].mxu1 }
0x1275   : > { %1550 = vrot.lane.b32.xlu1 %v1543_v16, %s2466_s23  ;;  %v2199_v17 = vpop.f32.mrb[37].mxu1  ;;  %s2936_s23 = sand.u32 1, %s2450_s22  }
0x1276   : > { %v1546_v18 = vpop.f32.mrb[38].mxu1  ;;  %s1946_s18 = sshll.u32 %s2936_s23, 3  ;;  %s1829_s15 = scalar_lea.sflag [#allocation5], %s2936_s23 }
0x1277   : > { %v2200_v19 = vpop.f32.mrb[39].mxu1  ;;  %s416_s19 = scalar_lea.vmem [#allocation4], %s1946_s18  ;;  %s2368_s18 = sshll.u32 %s2467_s16, 4  ;;  %s2369_s18 = int_to_ptr.vmem [resolvable:$false] %s2368_s18 }
0x1278   : > { %s1855_s26 = sshll.u32 %s416_s19, 4  ;;  %s2370_s0 = scalar_lea.vmem %s2369_s18, 256  ;;  %s1856_s26 = int_to_ptr.vmem [resolvable:$true] %s1855_s26 }
0x1279   : > { %s2364_s17 = scalar_lea.vmem %s1856_s26, 128  ;;  %p2371_p0 = scmp.lt.s32.totalorder %s1856_s26, %s2369_s18 }
0x127a   : > { %p2365_p11 = scmp.ne.s32.totalorder %s1856_s26, %s2364_s17  ;;  %p2372_p1 = scmp.lt.s32.totalorder %s2370_s0, %s2364_s17 }
0x127c   : > { %p2366_p12 = pnand %p2365_p11, %p2572_p5  ;;  %p2373_p2 = por %p2372_p1, %p2371_p0 }
0x127e   : > { %p2367_p13 = pneg %p2366_p12 }
0x1280   : > { %p2374_p3 = pnand %p2373_p2, %p2367_p13 }
0x12e7   : > { %v1551_v22 = vpop.permute.xlu1 %1550 }
0x12e8   : > { %v1553_v52 = vsel %vm723_vm3, %v1495_v10, %v1551_v22 }
0x12e9   : > { %v1554_v23 = vpack.c.bf16 %v1553_v52, %v1553_v52 }
0x12eb   : > { %2206 = vmatmul.mubr.msk.bf16.vlgmr.msra.gmra.mrb[16].mxu0 %vm570_vm1, %v1554_v23 }
0x12ec   : > { %2233 = vmatprep.mubr.msk.bf16.mxu0 %vm2462_vm2, %v2461_v45  ;;  %2218 = vmatpush3.bf16.msra.mxu0 %v2320_v48 }
0x12ed   : > { %2219 = vmatprep.subr.bf16.mxu0 %v2461_v45 }
0x12f0   : > { %2220 = vmatpush3.bf16.msra.mxu0 %v2321_v20 }
0x12f1   : > { %2221 = vmatprep.subr.bf16.mxu0 %v2461_v45 }
0x12f4   : > { %2222 = vmatpush3.bf16.msra.mxu0 %v2322_v21 }
0x12f5   : > { %2223 = vmatprep.subr.bf16.mxu0 %v2461_v45 }
0x12f8   : > { %2224 = vmatpush3.bf16.msra.mxu0 %v2323_v49 }
0x12f9   : > { %2225 = vmatprep.subr.bf16.mxu0 %v2461_v45 }
0x12fc   : > { %2226 = vmatpush3.bf16.msra.mxu0 %v2324_v50 }
0x12fd   : > { %2227 = vmatprep.subr.bf16.mxu0 %v2461_v45 }
0x1300   : > { %2228 = vmatpush3.bf16.msra.mxu0 %v2325_v55 }
0x1301   : > { %2229 = vmatprep.subr.bf16.mxu0 %v2461_v45 }
0x1304   : > { %2230 = vmatpush3.bf16.msra.mxu0 %v2326_v57 }
0x1305   : > { %2231 = vmatprep.subr.bf16.mxu0 %v2461_v45 }
0x1308   : > { %2232 = vmatpush3.bf16.msra.mxu0 %v2327_v11 }
0x13be   : > { %v1604_v25 = vpop.f32.mrb[16].mxu0 }
0x13bf   : > { %v1610_v54 = vadd.f32 %v1604_v25, %v2800_v62  ;;  %v2207_v26 = vpop.f32.mrb[17].mxu0  ;;  %v2319_v62 = vld [vmem:[%s3031_s6 + $0x18] sm:$0xff]  }
0x13c0   : > { %v1607_v27 = vpop.f32.mrb[18].mxu0  ;;  %2212 = vmatpush3.bf16.msra.mxu1 %v2319_v62 }
0x13c1   : > { %v2881_v28 = vadd.f32 %v1614_v24, %v1610_v54  ;;  %v2208_v29 = vpop.f32.mrb[19].mxu0 }
0x13c3   : > { %v1616_v30 = vsel %vm570_vm1, %v2881_v28, 0.0 }
0x13c4   : > { %1617 = vadd.xlane.f32.xlu0 %v1616_v30 }
0x1451   : > { %v1618_v31 = vpop.xlane.xlu0 %1617 }
0x1452   : > { %v1619_v32 = vmul.f32 0.03125, %v1618_v31 }
0x1454   : > { %v1620_v33 = vsub.f32 %v2881_v28, %v1619_v32 }
0x1456   : > { %v1621_v34 = vmul.f32 %v1620_v33, %v1620_v33 }
0x1458   : > { %v1622_v35 = vsel %vm570_vm1, %v1621_v34, 0.0 }
0x1459   : > { %1623 = vadd.xlane.f32.xlu1 %v1622_v35 }
0x14e6   : > { %v1624_v36 = vpop.xlane.xlu1 %1623 }
0x14e7   : > { %v1625_v38 = vmul.f32 0.03125, %v1624_v36 }
0x14e9   : > { %v1626_v39 = vadd.f32 1e-05, %v1625_v38 }
0x14eb   : > { %2356 = vrsqrt.f32 %v1626_v39 }
0x14f5   : > { %v2357_v41 = vpop.eup %2356 }
0x14f6   : > { %v1628_v42 = vmul.f32 %v2357_v41, %v1620_v33 }
0x14f8   : > { %v1633_v44 = vmul.f32 %v1632_v40, %v1628_v42 }
0x14fa   : > { %v1638_v46 = vadd.f32 %v1637_v43, %v1633_v44 }
0x14fc   : > { %v1639_v47 = vpack.c.bf16 %v1638_v46, %v1638_v46 }
0x14fe   : > { %2214 = vmatmul.mubr.msk.bf16.vlgmr.msra.gmra.mrb[40].mxu1 %vm570_vm1, %v1639_v47 }
0x15d1   : > { %v1695_v59 = vpop.f32.mrb[40].mxu1 }
0x15d2   : > { %v1696_v60 = vadd.f32 %v2030_v58, %v1695_v59  ;;  %v2215_v61 = vpop.f32.mrb[41].mxu1 }
0x15d3   : > { %v1698_v63 = vpop.f32.mrb[42].mxu1 }
0x15d4   : > { %v2034_v0 = vmul.f32 -1.702, %v1696_v60  ;;  %v2216_v2 = vpop.f32.mrb[43].mxu1 }
0x15d6   : > { %v1703_v3 = vmul.f32 1.442695, %v2034_v0 }
0x15d8   : > { %2358 = vpow2.f32 %v1703_v3 }
0x15e2   : > { %v2359_v4 = vpop.eup %2358 }
0x15e3   : > { %v1705_v45 = vadd.f32 1.0, %v2359_v4 }
0x15e5   : > { %2360 = vrcp.f32 %v1705_v45 }
0x15ef   : > { %v2361_v5 = vpop.eup %2360 }
0x15f0   : > { %v1708_v6 = vmul.f32 %v2361_v5, %v1696_v60 }
0x15f2   : > { %v1709_v53 = vpack.c.bf16 %v1708_v6, %v1708_v6 }
0x15f4   : > { %2234 = vmatmul.mubr.bf16.vlgmr.msra.gmra.mrb[20].mxu0 %v1709_v53 }
0x16c7   : > { %v1792_v8 = vpop.f32.mrb[20].mxu0 }
0x16c8   : > { %v1798_v9 = vadd.f32 %v1792_v8, %v2881_v28  ;;  %v2235_v10 = vpop.f32.mrb[21].mxu0 }
0x16c9   : > { %v1795_v13 = vpop.f32.mrb[22].mxu0 }
0x16ca   : > { %v1803_v14 = vadd.f32 %v1802_v7, %v1798_v9  ;;  %v2236_v15 = vpop.f32.mrb[23].mxu0 }
0x16cc   : > { %v1808_v37 = vsel %vm1807_vm7, %v1803_v14, 0.0  ;;  %1804 = vst.msk [vmem:[%s416_s19] sm:$0xff] %vm570_vm1, %v1803_v14 }
0x16cd   : > { %1809 = vadd.xlane.f32.xlu0 %v1808_v37 }
0x175a   : > { %v1810_v51 = vpop.xlane.xlu0 %1809 }
0x175b   : > { %v1811_v56 = vmul.f32 0.03125, %v1810_v51 }
0x175d   : > { %v1812_v12 = vsub.f32 %v1803_v14, %v1811_v56 }
0x175f   : > { %v1813_v16 = vmul.f32 %v1812_v12, %v1812_v12 }
0x1761   : > { %v1814_v17 = vsel %vm1807_vm7, %v1813_v16, 0.0 }
0x1762   : > { %1815 = vadd.xlane.f32.xlu0 %v1814_v17 }
0x1763   : > { %2377 = shalt.err (!%p2374_p3)
}
0x1764   : > { %s2378_s19 = scalar_lea.hbm %s2950_s29, 128  ;;  %s2382_s28 = scalar_lea.hbm %s3037_s12, 256 }
0x1765   : > { %p2379_p4 = scmp.ne.s32.totalorder %s2950_s29, %s2378_s19  ;;  %p2383_p9 = scmp.lt.u32.totalorder %s2950_s29, %s3037_s12 }
0x1766   : > { %p2384_p10 = scmp.lt.u32.totalorder %s2382_s28, %s2378_s19  ;;  %p2386_p12 = scmp.lt.u32.totalorder %s2378_s19, %s2950_s29 }
0x1767   : > { %p2380_p7 = pnand %p2379_p4, %p2572_p5 }
0x1768   : > { %p2385_p11 = por %p2384_p10, %p2383_p9 }
0x1769   : > { %p2381_p8 = pneg %p2380_p7 }
0x176a   : > { %p2387_p13 = por %p2386_p12, %p2385_p11 }
0x176c   : > { %p2388_p0 = pnand %p2387_p13, %p2381_p8 }
0x176e   : > { %2391 = shalt.err (!%p2388_p0)
}
0x176f   : > { %2238 = dma.vmem_to_hbm [thread:$0]  (%p2572_p5), %s1856_s26, 128, %s2950_s29, %s1829_s15   ;;  %v1805_v23 = vld [vmem:[%s3028_s3 + $0x2] sm:$0x1]  ;;  %v1806_v25 = vld [vmem:[%s3028_s3 + $0x3] sm:$0x1] }
0x1770   : > { %s2044_s30 = sshll.u32 %s2555_s25, 4  ;;  %s409_s28 = scalar_lea.vmem [#allocation2], %s2936_s23 }
0x1771   : > { %s1842_s16 = sshll.u32 %s409_s28, 4  ;;  %s2981_s15 = scalar_lea.hbm %s3036_s11, %s2044_s30  ;;  %s2983_s16 = int_to_ptr.vmem [resolvable:$true] %s1842_s16 }
0x1772   : > { %s1825_s18 = scalar_lea.sflag [#allocation3], %s2936_s23  ;;  %s2392_s0 = scalar_lea.vmem %s2983_s16, 16 }
0x1773   : > { %p2393_p1 = scmp.ne.s32.totalorder %s2983_s16, %s2392_s0  ;;  %s2468_s25 = smov [#allocation2]  }
0x1774   : > { %s2396_s17 = sshll.u32 %s2468_s25, 4  ;;  %s2397_s17 = int_to_ptr.vmem [resolvable:$false] %s2396_s17 }
0x1775   : > { %p2394_p2 = pnand %p2393_p1, %p2572_p5  ;;  %s2398_s19 = scalar_lea.vmem %s2397_s17, 32 }
0x1776   : > { %p2399_p4 = scmp.lt.s32.totalorder %s2983_s16, %s2397_s17  ;;  %p2400_p7 = scmp.lt.s32.totalorder %s2398_s19, %s2392_s0 }
0x1777   : > { %p2395_p3 = pneg %p2394_p2 }
0x1778   : > { %p2401_p8 = por %p2400_p7, %p2399_p4 }
0x177a   : > { %p2402_p9 = pnand %p2401_p8, %p2395_p3 }
0x17ef   : > { %v1816_v18 = vpop.xlane.xlu0 %1815 }
0x17f0   : > { %v1817_v19 = vmul.f32 0.03125, %v1816_v18 }
0x17f2   : > { %v1818_v22 = vadd.f32 1e-05, %v1817_v19 }
0x17f4   : > { %2362 = vrsqrt.f32 %v1818_v22 }
0x17fe   : > { %v2363_v52 = vpop.eup %2362 }
0x17ff   : > { %v1820_v24 = vmul.f32 %v2363_v52, %v1812_v12 }
0x1801   : > { %v1821_v54 = vmul.f32 %v1820_v24, %v1805_v23 }
0x1803   : > { %v1822_v26 = vadd.f32 %v1821_v54, %v1806_v25 }
0x1805   : > { %1823 = vst.msk [vmem:[%s409_s28] sm:$0x1] %vm1807_vm7, %v1822_v26 }
0x1806   : > { %2405 = shalt.err (!%p2402_p9)
}
0x1807   : > { %s2406_s23 = scalar_lea.hbm %s2981_s15, 16  ;;  %s2410_s28 = scalar_lea.hbm %s3036_s11, 32 }
0x1808   : > { %p2407_p10 = scmp.ne.s32.totalorder %s2981_s15, %s2406_s23  ;;  %p2411_p13 = scmp.lt.u32.totalorder %s2981_s15, %s3036_s11 }
0x1809   : > { %p2412_p0 = scmp.lt.u32.totalorder %s2410_s28, %s2406_s23  ;;  %p2414_p2 = scmp.lt.u32.totalorder %s2406_s23, %s2981_s15 }
0x180a   : > { %p2408_p11 = pnand %p2407_p10, %p2572_p5 }
0x180b   : > { %p2413_p1 = por %p2412_p0, %p2411_p13 }
0x180c   : > { %p2409_p12 = pneg %p2408_p11 }
0x180d   : > { %p2415_p3 = por %p2414_p2, %p2413_p1 }
0x180f   : > { %p2416_p4 = pnand %p2415_p3, %p2409_p12 }
0x1811   : > { %2419 = shalt.err (!%p2416_p4)
}
0x1812   : > { %2237 = dma.vmem_to_hbm [thread:$0]  (%p2572_p5), %s2983_s16, 16, %s2981_s15, %s1825_s18  }
0x1813 PF: > { %p2248_p7 = scmp.ge.s32.totalorder %s2458_s24, 2  ;;  %s1867_s0 = sand.u32 1, %s2446_s21  }
0x1814   : > { %s1868_s25 = scalar_lea.sflag [#allocation3], %s1867_s0 }
0x1815   : > { %p2242_p8 = pnand %p2248_p7, %p2576_p6 }
0x1817   : > { %2437 = dma.done.wait (!%p2242_p8), %s1868_s25, 16  }
0x1818   : > { %2439 = vsyncadd (!%p2242_p8), %s1868_s25, 4294967280  ;;  %s1876_s17 = scalar_lea.sflag [#allocation5], %s1867_s0 }
0x1819   : > { %2441 = dma.done.wait (!%p2242_p8), %s1876_s17, 128  }
0x181a   : > { %2443 = vsyncadd (!%p2242_p8), %s1876_s17, 4294967168  ;;  %s3045_s13 = sld [smem:[#allocation8_spill]]  ;;  %s3046_s23 = sld [smem:[#allocation9_spill]] }
0x181b   : > { %p26_p5 = scmp.ge.s32.totalorder %s2559_s27, 4   ;;  %s3047_s21 = smov %s2450_s22 }
0x181c   : > { %s3049_s24 = smov %s2559_s27 }
0x181d   :  { %28 = sbr.rel (!%p26_p5) target bundleno = 7 (0x7), region = 123 }
0x1820   : > { %s3048_s22 = smov %s3045_s13 }
0x1824   :  { %1881 = vsyncpa [#allocation3], 1 }
0x1825   :  { %1883 = vsyncpa [#allocation3 + $0x1], 1 }
0x1826   :  { %1884 = vsyncpa [#allocation5], 1 }
0x1827   :  { %1886 = vsyncpa [#allocation5 + $0x1], 1 }

</bundles_post_ra>
